<compile_context>
chip_gen: v7x
topology: tpu7x:2x2x1
jax: 0.10.0
libtpu: 0.0.40
codegen_flags: <defaults>
</compile_context>

<pallas_src>
from functools import partial

import jax
import jax.numpy as jnp
from jax.experimental import pallas as pl
from jax.experimental.pallas import tpu as pltpu


def rrn_layer_kernel(src_idx_ref, dst_idx_ref, dst_idx_row_ref,
                     h_full_ref, h_tile_ref,
                     wm1_ref, wm2_ref, b_msg_ref,
                     wn1_ref, wn2_ref, b_node_ref,
                     h_out_ref,
                     hw1_ref, hw2_ref, m_acc_ref,
                     *, tile_nodes, num_nodes_padded):
    i = pl.program_id(0)                  # node tile (parallel)
    k = pl.program_id(1)                  # edge tile (reduction, last axis)
    TN = tile_nodes
    Np = num_nodes_padded
    TE = src_idx_ref.shape[0]

    # ---- per-node-tile init (k == 0): zero accumulator, pre-project h ------
    @pl.when(k == 0)
    def _():
        m_acc_ref[...] = jnp.zeros_like(m_acc_ref)
        h = h_full_ref[...]                                       # (Np,Hp) bf16
        # cat([h_src, h_dst], -1) @ W_msg == gather(h@W1) + gather(h@W2)
        hw1_ref[...] = jnp.dot(h, wm1_ref[...],
                               preferred_element_type=jnp.float32
                               ).astype(jnp.bfloat16)
        hw2_ref[...] = jnp.dot(h, wm2_ref[...],
                               preferred_element_type=jnp.float32
                               ).astype(jnp.bfloat16)

    # ---- build one-hot incidence blocks in-kernel from edge indices --------
    src_idx = src_idx_ref[...]                                    # (TE,1) i32
    dst_idx = dst_idx_ref[...]                                    # (TE,1) i32
    node_lanes = jax.lax.broadcasted_iota(jnp.int32, (TE, Np), 1)
    src_oh = jnp.where(node_lanes == src_idx, 1.0, 0.0).astype(jnp.bfloat16)
    dst_oh = jnp.where(node_lanes == dst_idx, 1.0, 0.0).astype(jnp.bfloat16)

    # ---- apply_edges: e = ReLU(msg_layer(cat([h_src, h_dst], -1))) ---------
    e = (jnp.dot(src_oh, hw1_ref[...], preferred_element_type=jnp.float32)
         + jnp.dot(dst_oh, hw2_ref[...], preferred_element_type=jnp.float32)
         + b_msg_ref[...])
    e = jnp.maximum(e, 0.0)                                       # (TE,Hp) f32
    # TODO(synk): training-mode nn.Dropout(edge_drop) on e; eval is identity.

    # ---- update_all(copy_e, sum): scatter-add messages into this node tile -
    dst_row = dst_idx_row_ref[...]                                # (1,TE) i32
    node_rows = jax.lax.broadcasted_iota(jnp.int32, (TN, TE), 0) + i * TN
    dst_oh_t = jnp.where(node_rows == dst_row, 1.0, 0.0).astype(jnp.bfloat16)
    m_acc_ref[...] += jnp.dot(dst_oh_t, e.astype(jnp.bfloat16),
                              preferred_element_type=jnp.float32)

    # ---- apply_nodes on last edge tile: h_new = ReLU(node_mlp([h, m])) -----
    @pl.when(k == pl.num_programs(1) - 1)
    def _():
        h_t = h_tile_ref[...]                                     # (TN,Hp) bf16
        m_t = m_acc_ref[...].astype(jnp.bfloat16)
        h_new = (jnp.dot(h_t, wn1_ref[...], preferred_element_type=jnp.float32)
                 + jnp.dot(m_t, wn2_ref[...], preferred_element_type=jnp.float32)
                 + b_node_ref[...])
        h_out_ref[...] = jnp.maximum(h_new, 0.0)


def _round_up(x, m):
    return (x + m - 1) // m * m


def rrn_layer(h, src_idx, dst_idx, w_msg, b_msg, w_node, b_node,
              *, tile_nodes=64, tile_edges=128, lane=128):
    N, H = h.shape
    E = src_idx.shape[0]
    f32, bf16 = jnp.float32, jnp.bfloat16

    assert tile_nodes % 8 == 0 and tile_edges % lane == 0

    Hp = _round_up(H, lane)                       # lane-dense / MXU-friendly
    Np = _round_up(N, tile_nodes)
    Ep = _round_up(E, tile_edges)

    # Pad node states and parameters (zero-padded lanes stay zero through the
    # ReLU MLPs, so slicing the result back to (N, H) is exact).
    h_p = jnp.zeros((Np, Hp), f32).at[:N, :H].set(h).astype(bf16)

    def pad_w(w):
        return jnp.zeros((Hp, Hp), f32).at[:H, :H].set(w).astype(bf16)

    wm1, wm2 = pad_w(w_msg[:H]), pad_w(w_msg[H:])
    wn1, wn2 = pad_w(w_node[:H]), pad_w(w_node[H:])
    b_msg_p = jnp.zeros((1, Hp), f32).at[:, :H].set(b_msg.reshape(1, H))
    b_node_p = jnp.zeros((1, Hp), f32).at[:, :H].set(b_node.reshape(1, H))

    # Edge index vectors (padded edges get -1: match no node, contribute 0).
    pad_e = Ep - E
    pad = jnp.full((pad_e,), -1, jnp.int32)
    src_col = jnp.concatenate([src_idx.astype(jnp.int32), pad]).reshape(Ep, 1)
    dst_col = jnp.concatenate([dst_idx.astype(jnp.int32), pad]).reshape(Ep, 1)
    dst_row = dst_col.reshape(1, Ep)

    n_i = Np // tile_nodes
    n_k = Ep // tile_edges
    grid = (n_i, n_k)

    in_specs = [
        pl.BlockSpec((tile_edges, 1), lambda i, k: (k, 0)),    # src idx (col)
        pl.BlockSpec((tile_edges, 1), lambda i, k: (k, 0)),    # dst idx (col)
        pl.BlockSpec((1, tile_edges), lambda i, k: (0, k)),    # dst idx (row)
        pl.BlockSpec((Np, Hp), lambda i, k: (0, 0)),           # h (all nodes)
        pl.BlockSpec((tile_nodes, Hp), lambda i, k: (i, 0)),   # h (node tile)
        pl.BlockSpec((Hp, Hp), lambda i, k: (0, 0)),           # W_msg[:H]
        pl.BlockSpec((Hp, Hp), lambda i, k: (0, 0)),           # W_msg[H:]
        pl.BlockSpec((1, Hp), lambda i, k: (0, 0)),            # b_msg
        pl.BlockSpec((Hp, Hp), lambda i, k: (0, 0)),           # W_node[:H]
        pl.BlockSpec((Hp, Hp), lambda i, k: (0, 0)),           # W_node[H:]
        pl.BlockSpec((1, Hp), lambda i, k: (0, 0)),            # b_node
    ]
    out_specs = pl.BlockSpec((tile_nodes, Hp), lambda i, k: (i, 0))
    scratch_shapes = [
        pltpu.VMEM((Np, Hp), bf16),            # hW1
        pltpu.VMEM((Np, Hp), bf16),            # hW2
        pltpu.VMEM((tile_nodes, Hp), f32),     # m accumulator
    ]

    flops = (4 * n_i * Np * Hp * Hp            # hW1/hW2 pre-projection
             + 4 * Ep * Np * Hp * n_i          # one-hot gather matmuls
             + 2 * Ep * Np * Hp                # scatter-add matmul
             + 4 * Np * Hp * Hp)               # node-update matmuls
    bytes_accessed = int(2 * h_p.size * 2      # h passed twice (bf16)
                         + 4 * Hp * Hp * 2     # weights (bf16)
                         + 2 * Hp * 4          # biases (f32)
                         + 3 * Ep * 4          # edge index vectors
                         + Np * Hp * 4)        # output (f32)

    out = pl.pallas_call(
        partial(rrn_layer_kernel, tile_nodes=tile_nodes, num_nodes_padded=Np),
        out_shape=jax.ShapeDtypeStruct((Np, Hp), f32),
        grid=grid,
        in_specs=in_specs,
        out_specs=out_specs,
        scratch_shapes=scratch_shapes,
        compiler_params=pltpu.CompilerParams(
            dimension_semantics=("parallel", "arbitrary"),
            vmem_limit_bytes=32 * 1024 * 1024,
        ),
        cost_estimate=pl.CostEstimate(flops=flops, transcendentals=0,
                                      bytes_accessed=bytes_accessed),
    )(src_col, dst_col, dst_row, h_p, h_p,
      wm1, wm2, b_msg_p, wn1, wn2, b_node_p)

    return out[:N, :H]


def rrn_layer_reference(h, src_idx, dst_idx, w_msg, b_msg, w_node, b_node):
    """Plain-JAX f32 reference mirroring the PyTorch/DGL forward (eval mode)."""
    N, H = h.shape
    src_h = h[src_idx]
    dst_h = h[dst_idx]
    e = jnp.maximum(jnp.concatenate([src_h, dst_h], -1) @ w_msg + b_msg, 0.0)
    m = jnp.zeros((N, H), h.dtype).at[dst_idx].add(e)
    return jnp.maximum(jnp.concatenate([h, m], -1) @ w_node + b_node, 0.0)


if __name__ == "__main__":
    # Sudoku-like RRN graph scale: 81 cells, ~20 neighbours each, hidden=32.
    N, E, H = 81, 1620, 32

    key = jax.random.PRNGKey(0)
    k_h, k_src, k_dst, k_wm, k_bm, k_wn, k_bn = jax.random.split(key, 7)

    h = jax.random.normal(k_h, (N, H), dtype=jnp.float32)
    src_idx = jax.random.randint(k_src, (E,), 0, N, dtype=jnp.int32)
    dst_idx = jax.random.randint(k_dst, (E,), 0, N, dtype=jnp.int32)

    bound = 1.0 / jnp.sqrt(2.0 * H)
    w_msg = jax.random.uniform(k_wm, (2 * H, H), jnp.float32, -bound, bound)
    b_msg = jax.random.uniform(k_bm, (H,), jnp.float32, -bound, bound)
    w_node = jax.random.uniform(k_wn, (2 * H, H), jnp.float32, -bound, bound)
    b_node = jax.random.uniform(k_bn, (H,), jnp.float32, -bound, bound)

    out = rrn_layer(h, src_idx, dst_idx, w_msg, b_msg, w_node, b_node)
    out = jax.block_until_ready(out)

    ref = rrn_layer_reference(h, src_idx, dst_idx, w_msg, b_msg, w_node, b_node)
    assert out.shape == (N, H) and out.dtype == jnp.float32

    # bf16 MXU operands with f32 accumulation -> compare against the f32
    # reference with a bf16-appropriate tolerance.
    rel_err = float(jnp.max(jnp.abs(out - ref)) / (jnp.max(jnp.abs(ref)) + 1e-6))
    assert rel_err < 3e-2, f"mismatch vs reference: rel_err={rel_err}"

    print("KERNEL_OK")
</pallas_src>

<mosaic_0001>
module attributes {stable_mosaic.version = 11 : i64} {
  func.func @rrn_layer_kernel(%arg0: i32, %arg1: i32, %arg2: memref<128x1xi32, #tpu.memory_space<vmem>>, %arg3: memref<128x1xi32, #tpu.memory_space<vmem>>, %arg4: memref<1x128xi32, #tpu.memory_space<vmem>>, %arg5: memref<128x128xbf16, #tpu.memory_space<vmem>>, %arg6: memref<64x128xbf16, #tpu.memory_space<vmem>>, %arg7: memref<128x128xbf16, #tpu.memory_space<vmem>>, %arg8: memref<128x128xbf16, #tpu.memory_space<vmem>>, %arg9: memref<1x128xf32, #tpu.memory_space<vmem>>, %arg10: memref<128x128xbf16, #tpu.memory_space<vmem>>, %arg11: memref<128x128xbf16, #tpu.memory_space<vmem>>, %arg12: memref<1x128xf32, #tpu.memory_space<vmem>>, %arg13: memref<64x128xf32, #tpu.memory_space<vmem>>, %arg14: memref<128x128xbf16, #tpu.memory_space<vmem>>, %arg15: memref<128x128xbf16, #tpu.memory_space<vmem>>, %arg16: memref<64x128xf32, #tpu.memory_space<vmem>>) attributes {dimension_semantics = [#tpu.dimension_semantics<parallel>, #tpu.dimension_semantics<arbitrary>], iteration_bounds = array<i64: 2, 13>, scalar_prefetch = 0 : i64, scratch_operands = 3 : i64, tpu.core_type = #tpu.core_type<tc>, window_params = [{transform_indices = @transform_0, window_bounds = array<i64: 128, 1>}, {transform_indices = @transform_1, window_bounds = array<i64: 128, 1>}, {transform_indices = @transform_2, window_bounds = array<i64: 1, 128>}, {pipeline_mode = #tpu.pipeline_mode<synchronous>, transform_indices = @transform_3, window_bounds = array<i64: 128, 128>}, {transform_indices = @transform_4, window_bounds = array<i64: 64, 128>}, {pipeline_mode = #tpu.pipeline_mode<synchronous>, transform_indices = @transform_5, window_bounds = array<i64: 128, 128>}, {pipeline_mode = #tpu.pipeline_mode<synchronous>, transform_indices = @transform_6, window_bounds = array<i64: 128, 128>}, {pipeline_mode = #tpu.pipeline_mode<synchronous>, transform_indices = @transform_7, window_bounds = array<i64: 1, 128>}, {pipeline_mode = #tpu.pipeline_mode<synchronous>, transform_indices = @transform_8, window_bounds = array<i64: 128, 128>}, {pipeline_mode = #tpu.pipeline_mode<synchronous>, transform_indices = @transform_9, window_bounds = array<i64: 128, 128>}, {pipeline_mode = #tpu.pipeline_mode<synchronous>, transform_indices = @transform_10, window_bounds = array<i64: 1, 128>}, {transform_indices = @transform_11, window_bounds = array<i64: 64, 128>}]} {
    %c0_i32 = arith.constant 0 : i32
    %0 = arith.cmpi eq, %arg1, %c0_i32 : i32
    %1 = arith.extui %0 : i1 to i32
    %c0_i32_0 = arith.constant 0 : i32
    %2 = arith.cmpi ne, %1, %c0_i32_0 : i32
    scf.if %2 {
      %cst_26 = arith.constant 0.000000e+00 : f32
      %47 = vector.broadcast %cst_26 : f32 to vector<64x128xf32>
      %c0_27 = arith.constant 0 : index
      %c0_28 = arith.constant 0 : index
      %48 = vector.load %arg16[%c0_27, %c0_28] : memref<64x128xf32, #tpu.memory_space<vmem>>, vector<64x128xf32>
      tpu.vector_store %arg16[%c0_27, %c0_28], %47 {strides = array<i32>} : memref<64x128xf32, #tpu.memory_space<vmem>>, vector<64x128xf32>,
      %c0_29 = arith.constant 0 : index
      %c0_30 = arith.constant 0 : index
      %49 = vector.load %arg5[%c0_29, %c0_30] : memref<128x128xbf16, #tpu.memory_space<vmem>>, vector<128x128xbf16>
      %c0_31 = arith.constant 0 : index
      %c0_32 = arith.constant 0 : index
      %50 = vector.load %arg7[%c0_31, %c0_32] : memref<128x128xbf16, #tpu.memory_space<vmem>>, vector<128x128xbf16>
      %cst_33 = arith.constant dense<0.000000e+00> : vector<128x128xf32>
      %51 = tpu.matmul %49, %50, %cst_33 {dimension_numbers = #tpu.dot_dimension_numbers<[1], [0], [0], [1], [0, 0, 1, 1], [], []>} : vector<128x128xbf16>, vector<128x128xbf16>, vector<128x128xf32> -> vector<128x128xf32>
      %52 = arith.truncf %51 : vector<128x128xf32> to vector<128x128xbf16>
      %c0_34 = arith.constant 0 : index
      %c0_35 = arith.constant 0 : index
      %53 = vector.load %arg14[%c0_34, %c0_35] : memref<128x128xbf16, #tpu.memory_space<vmem>>, vector<128x128xbf16>
      tpu.vector_store %arg14[%c0_34, %c0_35], %52 {strides = array<i32>} : memref<128x128xbf16, #tpu.memory_space<vmem>>, vector<128x128xbf16>,
      %c0_36 = arith.constant 0 : index
      %c0_37 = arith.constant 0 : index
      %54 = vector.load %arg8[%c0_36, %c0_37] : memref<128x128xbf16, #tpu.memory_space<vmem>>, vector<128x128xbf16>
      %cst_38 = arith.constant dense<0.000000e+00> : vector<128x128xf32>
      %55 = tpu.matmul %49, %54, %cst_38 {dimension_numbers = #tpu.dot_dimension_numbers<[1], [0], [0], [1], [0, 0, 1, 1], [], []>} : vector<128x128xbf16>, vector<128x128xbf16>, vector<128x128xf32> -> vector<128x128xf32>
      %56 = arith.truncf %55 : vector<128x128xf32> to vector<128x128xbf16>
      %c0_39 = arith.constant 0 : index
      %c0_40 = arith.constant 0 : index
      %57 = vector.load %arg15[%c0_39, %c0_40] : memref<128x128xbf16, #tpu.memory_space<vmem>>, vector<128x128xbf16>
      tpu.vector_store %arg15[%c0_39, %c0_40], %56 {strides = array<i32>} : memref<128x128xbf16, #tpu.memory_space<vmem>>, vector<128x128xbf16>,
    } else {
    }
    %c0 = arith.constant 0 : index
    %c0_1 = arith.constant 0 : index
    %3 = vector.load %arg2[%c0, %c0_1] : memref<128x1xi32, #tpu.memory_space<vmem>>, vector<128x1xi32>
    %c0_2 = arith.constant 0 : index
    %c0_3 = arith.constant 0 : index
    %4 = vector.load %arg3[%c0_2, %c0_3] : memref<128x1xi32, #tpu.memory_space<vmem>>, vector<128x1xi32>
    %5 = tpu.iota {dimensions = array<i32: 1>} : vector<128x128xi32>
    %6 = vector.broadcast %3 : vector<128x1xi32> to vector<128x128xi32>
    %7 = arith.cmpi eq, %5, %6 : vector<128x128xi32>
    %cst = arith.constant 1.000000e+00 : f32
    %cst_4 = arith.constant 0.000000e+00 : f32
    %8 = vector.broadcast %cst : f32 to vector<128x128xf32>
    %9 = vector.broadcast %cst_4 : f32 to vector<128x128xf32>
    %10 = arith.select %7, %8, %9 : vector<128x128xi1>, vector<128x128xf32>
    %11 = arith.truncf %10 : vector<128x128xf32> to vector<128x128xbf16>
    %12 = vector.broadcast %4 : vector<128x1xi32> to vector<128x128xi32>
    %13 = arith.cmpi eq, %5, %12 : vector<128x128xi32>
    %cst_5 = arith.constant 1.000000e+00 : f32
    %cst_6 = arith.constant 0.000000e+00 : f32
    %14 = vector.broadcast %cst_5 : f32 to vector<128x128xf32>
    %15 = vector.broadcast %cst_6 : f32 to vector<128x128xf32>
    %16 = arith.select %13, %14, %15 : vector<128x128xi1>, vector<128x128xf32>
    %17 = arith.truncf %16 : vector<128x128xf32> to vector<128x128xbf16>
    %c0_7 = arith.constant 0 : index
    %c0_8 = arith.constant 0 : index
    %18 = vector.load %arg14[%c0_7, %c0_8] : memref<128x128xbf16, #tpu.memory_space<vmem>>, vector<128x128xbf16>
    %cst_9 = arith.constant dense<0.000000e+00> : vector<128x128xf32>
    %19 = tpu.matmul %11, %18, %cst_9 {dimension_numbers = #tpu.dot_dimension_numbers<[1], [0], [0], [1], [0, 0, 1, 1], [], []>} : vector<128x128xbf16>, vector<128x128xbf16>, vector<128x128xf32> -> vector<128x128xf32>
    %c0_10 = arith.constant 0 : index
    %c0_11 = arith.constant 0 : index
    %20 = vector.load %arg15[%c0_10, %c0_11] : memref<128x128xbf16, #tpu.memory_space<vmem>>, vector<128x128xbf16>
    %cst_12 = arith.constant dense<0.000000e+00> : vector<128x128xf32>
    %21 = tpu.matmul %17, %20, %cst_12 {dimension_numbers = #tpu.dot_dimension_numbers<[1], [0], [0], [1], [0, 0, 1, 1], [], []>} : vector<128x128xbf16>, vector<128x128xbf16>, vector<128x128xf32> -> vector<128x128xf32>
    %22 = arith.addf %19, %21 : vector<128x128xf32>
    %c0_13 = arith.constant 0 : index
    %c0_14 = arith.constant 0 : index
    %23 = vector.load %arg9[%c0_13, %c0_14] : memref<1x128xf32, #tpu.memory_space<vmem>>, vector<1x128xf32>
    %24 = vector.broadcast %23 : vector<1x128xf32> to vector<128x128xf32>
    %25 = arith.addf %22, %24 : vector<128x128xf32>
    %cst_15 = arith.constant 0.000000e+00 : f32
    %26 = vector.broadcast %cst_15 : f32 to vector<128x128xf32>
    %27 = arith.maximumf %25, %26 : vector<128x128xf32>
    %c0_16 = arith.constant 0 : index
    %c0_17 = arith.constant 0 : index
    %28 = vector.load %arg4[%c0_16, %c0_17] : memref<1x128xi32, #tpu.memory_space<vmem>>, vector<1x128xi32>
    %29 = tpu.iota {dimensions = array<i32: 0>} : vector<64x128xi32>
    %c64_i32 = arith.constant 64 : i32
    %30 = arith.muli %arg0, %c64_i32 : i32
    %31 = vector.broadcast %30 : i32 to vector<64x128xi32>
    %32 = arith.addi %29, %31 : vector<64x128xi32>
    %33 = vector.broadcast %28 : vector<1x128xi32> to vector<64x128xi32>
    %34 = arith.cmpi eq, %32, %33 : vector<64x128xi32>
    %cst_18 = arith.constant 1.000000e+00 : f32
    %cst_19 = arith.constant 0.000000e+00 : f32
    %35 = vector.broadcast %cst_18 : f32 to vector<64x128xf32>
    %36 = vector.broadcast %cst_19 : f32 to vector<64x128xf32>
    %37 = arith.select %34, %35, %36 : vector<64x128xi1>, vector<64x128xf32>
    %38 = arith.truncf %37 : vector<64x128xf32> to vector<64x128xbf16>
    %c0_20 = arith.constant 0 : index
    %c0_21 = arith.constant 0 : index
    %39 = vector.load %arg16[%c0_20, %c0_21] : memref<64x128xf32, #tpu.memory_space<vmem>>, vector<64x128xf32>
    %40 = arith.truncf %27 : vector<128x128xf32> to vector<128x128xbf16>
    %cst_22 = arith.constant dense<0.000000e+00> : vector<64x128xf32>
    %41 = tpu.matmul %38, %40, %cst_22 {dimension_numbers = #tpu.dot_dimension_numbers<[1], [0], [0], [1], [0, 0, 1, 1], [], []>} : vector<64x128xbf16>, vector<128x128xbf16>, vector<64x128xf32> -> vector<64x128xf32>
    %42 = arith.addf %39, %41 : vector<64x128xf32>
    %c0_23 = arith.constant 0 : index
    %c0_24 = arith.constant 0 : index
    %43 = vector.load %arg16[%c0_23, %c0_24] : memref<64x128xf32, #tpu.memory_space<vmem>>, vector<64x128xf32>
    tpu.vector_store %arg16[%c0_23, %c0_24], %42 {strides = array<i32>} : memref<64x128xf32, #tpu.memory_space<vmem>>, vector<64x128xf32>,
    %c12_i32 = arith.constant 12 : i32
    %44 = arith.cmpi eq, %arg1, %c12_i32 : i32
    %45 = arith.extui %44 : i1 to i32
    %c0_i32_25 = arith.constant 0 : i32
    %46 = arith.cmpi ne, %45, %c0_i32_25 : i32
    scf.if %46 {
      %c0_26 = arith.constant 0 : index
      %c0_27 = arith.constant 0 : index
      %47 = vector.load %arg6[%c0_26, %c0_27] : memref<64x128xbf16, #tpu.memory_space<vmem>>, vector<64x128xbf16>
      %c0_28 = arith.constant 0 : index
      %c0_29 = arith.constant 0 : index
      %48 = vector.load %arg16[%c0_28, %c0_29] : memref<64x128xf32, #tpu.memory_space<vmem>>, vector<64x128xf32>
      %49 = arith.truncf %48 : vector<64x128xf32> to vector<64x128xbf16>
      %c0_30 = arith.constant 0 : index
      %c0_31 = arith.constant 0 : index
      %50 = vector.load %arg10[%c0_30, %c0_31] : memref<128x128xbf16, #tpu.memory_space<vmem>>, vector<128x128xbf16>
      %cst_32 = arith.constant dense<0.000000e+00> : vector<64x128xf32>
      %51 = tpu.matmul %47, %50, %cst_32 {dimension_numbers = #tpu.dot_dimension_numbers<[1], [0], [0], [1], [0, 0, 1, 1], [], []>} : vector<64x128xbf16>, vector<128x128xbf16>, vector<64x128xf32> -> vector<64x128xf32>
      %c0_33 = arith.constant 0 : index
      %c0_34 = arith.constant 0 : index
      %52 = vector.load %arg11[%c0_33, %c0_34] : memref<128x128xbf16, #tpu.memory_space<vmem>>, vector<128x128xbf16>
      %cst_35 = arith.constant dense<0.000000e+00> : vector<64x128xf32>
      %53 = tpu.matmul %49, %52, %cst_35 {dimension_numbers = #tpu.dot_dimension_numbers<[1], [0], [0], [1], [0, 0, 1, 1], [], []>} : vector<64x128xbf16>, vector<128x128xbf16>, vector<64x128xf32> -> vector<64x128xf32>
      %54 = arith.addf %51, %53 : vector<64x128xf32>
      %c0_36 = arith.constant 0 : index
      %c0_37 = arith.constant 0 : index
      %55 = vector.load %arg12[%c0_36, %c0_37] : memref<1x128xf32, #tpu.memory_space<vmem>>, vector<1x128xf32>
      %56 = vector.broadcast %55 : vector<1x128xf32> to vector<64x128xf32>
      %57 = arith.addf %54, %56 : vector<64x128xf32>
      %cst_38 = arith.constant 0.000000e+00 : f32
      %58 = vector.broadcast %cst_38 : f32 to vector<64x128xf32>
      %59 = arith.maximumf %57, %58 : vector<64x128xf32>
      %c0_39 = arith.constant 0 : index
      %c0_40 = arith.constant 0 : index
      %60 = vector.load %arg13[%c0_39, %c0_40] : memref<64x128xf32, #tpu.memory_space<vmem>>, vector<64x128xf32>
      tpu.vector_store %arg13[%c0_39, %c0_40], %59 {strides = array<i32>} : memref<64x128xf32, #tpu.memory_space<vmem>>, vector<64x128xf32>,
    } else {
    }
    return
  }
  func.func @transform_0(%arg0: i32, %arg1: i32) -> (i32, i32) {
    %c0_i32 = arith.constant 0 : i32
    %c0_i32_0 = arith.constant 0 : i32
    return %arg1, %c0_i32 : i32, i32
  }
  func.func @transform_1(%arg0: i32, %arg1: i32) -> (i32, i32) {
    %c0_i32 = arith.constant 0 : i32
    %c0_i32_0 = arith.constant 0 : i32
    return %arg1, %c0_i32 : i32, i32
  }
  func.func @transform_2(%arg0: i32, %arg1: i32) -> (i32, i32) {
    %c0_i32 = arith.constant 0 : i32
    %c0_i32_0 = arith.constant 0 : i32
    return %c0_i32, %arg1 : i32, i32
  }
  func.func @transform_3(%arg0: i32, %arg1: i32) -> (i32, i32) {
    %c0_i32 = arith.constant 0 : i32
    %c0_i32_0 = arith.constant 0 : i32
    %c0_i32_1 = arith.constant 0 : i32
    return %c0_i32, %c0_i32_0 : i32, i32
  }
  func.func @transform_4(%arg0: i32, %arg1: i32) -> (i32, i32) {
    %c0_i32 = arith.constant 0 : i32
    %c0_i32_0 = arith.constant 0 : i32
    return %arg0, %c0_i32 : i32, i32
  }
  func.func @transform_5(%arg0: i32, %arg1: i32) -> (i32, i32) {
    %c0_i32 = arith.constant 0 : i32
    %c0_i32_0 = arith.constant 0 : i32
    %c0_i32_1 = arith.constant 0 : i32
    return %c0_i32, %c0_i32_0 : i32, i32
  }
  func.func @transform_6(%arg0: i32, %arg1: i32) -> (i32, i32) {
    %c0_i32 = arith.constant 0 : i32
    %c0_i32_0 = arith.constant 0 : i32
    %c0_i32_1 = arith.constant 0 : i32
    return %c0_i32, %c0_i32_0 : i32, i32
  }
  func.func @transform_7(%arg0: i32, %arg1: i32) -> (i32, i32) {
    %c0_i32 = arith.constant 0 : i32
    %c0_i32_0 = arith.constant 0 : i32
    %c0_i32_1 = arith.constant 0 : i32
    return %c0_i32, %c0_i32_0 : i32, i32
  }
  func.func @transform_8(%arg0: i32, %arg1: i32) -> (i32, i32) {
    %c0_i32 = arith.constant 0 : i32
    %c0_i32_0 = arith.constant 0 : i32
    %c0_i32_1 = arith.constant 0 : i32
    return %c0_i32, %c0_i32_0 : i32, i32
  }
  func.func @transform_9(%arg0: i32, %arg1: i32) -> (i32, i32) {
    %c0_i32 = arith.constant 0 : i32
    %c0_i32_0 = arith.constant 0 : i32
    %c0_i32_1 = arith.constant 0 : i32
    return %c0_i32, %c0_i32_0 : i32, i32
  }
  func.func @transform_10(%arg0: i32, %arg1: i32) -> (i32, i32) {
    %c0_i32 = arith.constant 0 : i32
    %c0_i32_0 = arith.constant 0 : i32
    %c0_i32_1 = arith.constant 0 : i32
    return %c0_i32, %c0_i32_0 : i32, i32
  }
  func.func @transform_11(%arg0: i32, %arg1: i32) -> (i32, i32) {
    %c0_i32 = arith.constant 0 : i32
    %c0_i32_0 = arith.constant 0 : i32
    return %arg0, %c0_i32 : i32, i32
  }
}

</mosaic_0001>

<bundles_post_ra>
// kernel: tpu_custom_call.1
= control target key start
LH: loop header
LB: loop body
LE: loop exit
PB: predicated region body
PF: predicated region fallthrough
CT: control target
= control target key end

     0   :  { %s3104_s0 = inlined_call_operand.vmem [shape: s32[1664,1], index: 0, kind: input, shape index: {}]   ;;  %s3105_s1 = inlined_call_operand.vmem [shape: s32[1664,1], index: 1, kind: input, shape index: {}]   ;;  %s3106_s2 = inlined_call_operand.vmem [shape: s32[1,1664], index: 2, kind: input, shape index: {}]   ;;  %s3107_s3 = inlined_call_operand.vmem [shape: bf16[128,128], index: 3, kind: input, shape index: {}]   ;;  %s3108_s4 = inlined_call_operand.vmem [shape: bf16[128,128], index: 4, kind: input, shape index: {}]   ;;  %s3109_s5 = inlined_call_operand.vmem [shape: bf16[128,128], index: 5, kind: input, shape index: {}]   ;;  %s3110_s6 = inlined_call_operand.vmem [shape: bf16[128,128], index: 6, kind: input, shape index: {}]   ;;  %s3111_s7 = inlined_call_operand.vmem [shape: f32[1,128], index: 7, kind: input, shape index: {}]   ;;  %s3112_s8 = inlined_call_operand.vmem [shape: bf16[128,128], index: 8, kind: input, shape index: {}]   ;;  %s3113_s9 = inlined_call_operand.vmem [shape: bf16[128,128], index: 9, kind: input, shape index: {}]   ;;  %s3114_s10 = inlined_call_operand.vmem [shape: f32[1,128], index: 10, kind: input, shape index: {}]   ;;  %s3115_s11 = inlined_call_operand.hbm [shape: f32[128,128], index: 11, kind: output, shape index: {}]  }
   0x1   :  { %3128 = sst [smem:[#allocation18_spill]] %s3115_s11 }
   0x2   :  { %16 = vsyncpa [#allocation6], 0 }
   0x3   :  { %18 = vsyncpa [#allocation6 + $0x1], 0  ;;  %s2678_s17 = smov 0   ;;  %s2680_s18 = smov 0  }
   0x4   :  { %s2682_s19 = smov 0   ;;  %s2684_s20 = smov 0  }
   0x5   :  { %s2686_s21 = smov 0   ;;  %s2688_s22 = smov 0  }
   0x6   :  { %s2690_s23 = smov 0   ;;  %s2692_s24 = smov 0  }
   0x7 LB: > { %3129 = sst [smem:[#allocation8_spill]] %s2582_s17  ;;  %s1946_s25 = sadd.s32 4294967295, %s2610_s24   ;;  %s2610_s24 = sphi %s2692_s24, %s24_s24   ;;  %s2606_s23 = sphi %s2690_s23, %s3159_s23   ;;  %s2602_s22 = sphi %s2688_s22, %s3155_s22   ;;  %s2598_s21 = sphi %s2686_s21, %s3154_s21   ;;  %s2594_s20 = sphi %s2684_s20, %s3153_s20   ;;  %s2590_s19 = sphi %s2682_s19, %s3152_s19   ;;  %s2586_s18 = sphi %s2680_s18, %s3158_s18   ;;  %s2582_s17 = sphi %s2678_s17, %s3157_s17  }
   0x8   : > { %3130 = sst [smem:[#allocation9_spill]] %s2590_s19  ;;  %s1947_s26 = sadd.s32 4294967294, %s2610_s24  }
   0x9   : > { %3131 = sst [smem:[#allocation10_spill]] %s2602_s22  ;;  %s33_s27 = sadd.s32 1, %s2602_s22 }
   0xa   : > { %3132 = sst [smem:[#allocation11_spill]] %s2606_s23  ;;  %p34_p0 = scmp.ge.s32.totalorder %s33_s27, 13 }
   0xb   : > { %3133 = sst [smem:[#allocation12_spill]] %s2610_s24  ;;  %s36_s28 = sadd.s32 1, %s2606_s23 }
   0xc   : > { %p304_p1 = scmp.ne.s32.totalorder %s2590_s19, %s2586_s18  ;;  %p305_p2 = scmp.eq.s32.totalorder %s1946_s25, 25 }
   0xd   : > { %s3161_s27 = smov (%p34_p0, %s33_s27), 0  ;;  %s3163_s28 = smov (!%p34_p0, %s36_s28), %s2606_s23 }
   0xe   : > { %3134 = sst [smem:[#allocation13_spill]] %s3161_s27  ;;  %p2727_p3 = por %p305_p2, %p304_p1 }
   0xf   : > { %p310_p4 = scmp.ne.s32.totalorder %s2586_s18, %s2582_s17  ;;  %p38_p5 = scmp.ge.s32.totalorder %s3163_s28, 2 }
  0x10   : > { %s3135_s29 = scalar_select %p2727_p3, 1, 0 }
  0x11   : > { %p311_p6 = scmp.eq.s32.totalorder %s1947_s26, 25  ;;  %p1950_p7 = scmp.ge.s32.totalorder %s2610_s24, 1 }
  0x12   : > { %3136 = sst [smem:[#allocation14_spill]] %s3135_s29  ;;  %p383_p8 = scmp.lt.s32.totalorder %s2610_s24, 27 }
  0x13   : > { %s3165_s28 = smov (%p38_p5, %s3163_s28), 0  ;;  %p2737_p9 = por %p311_p6, %p310_p4 }
  0x14   : > { %3137 = sst [smem:[#allocation15_spill]] %s3165_s28  ;;  %p384_p10 = pnand %p1950_p7, %p383_p8 }
  0x15   : > { %s3138_s30 = scalar_select %p2737_p9, 1, 0 }
  0x16   : > { %s291_s12 = ssub.s32 %s2606_s23, %s3165_s28  ;;  %s294_s13 = sadd.s32 1, %s2590_s19 }
  0x17   : > { %3139 = sst [smem:[#allocation16_spill]] %s3138_s30  ;;  %p292_p11 = scmp.eq.s32.totalorder %s291_s12, 0 }
  0x18   : > { %387 = sbr.rel (%p384_p10) target bundleno = 1217 (0x4c1), region = 64  ;;  %s3121_s15 = sand.u32 (!%p384_p10), 1, %s2586_s18  }
  0x19   : > { %s2745_s14 = scalar_select %p292_p11, %s2590_s19, %s294_s13  }
  0x1a   : > { %s1952_s16 = sshll.u32 (!%p384_p10), %s2594_s20, 4  ;;  %s1951_s25 = sshll.u32 (!%p384_p10), %s3121_s15, 6 }
  0x1b   : > { %3140 = sst [smem:[#allocation17_spill]] %s2745_s14  ;;  %p437_p12 = scmp.lt.s32.totalorder (!%p384_p10), %s1952_s16, 207 }
  0x1c   : > { %p448_p13 = scmp.lt.s32.totalorder (!%p384_p10), %s2594_s20, 12  ;;  %s1956_s13 = sshll.u32 (!%p384_p10), %s2598_s21, 3 }
  0x1d   : > { %p452_p0 = scmp.lt.s32.totalorder (!%p384_p10), %s1956_s13, 15  ;;  %s2775_s27 = scalar_lea.vmem (!%p384_p10), [#allocation5], %s1951_s25 }
  0x1e   : > { %p1958_p1 = scmp.ne.s32.totalorder (!%p384_p10), %s2594_s20, 0 }
  0x1f   : > { %s3167_s16 = smov (!%p437_p12, %s1952_s16), 207  ;;  %s3169_s13 = smov (!%p452_p0, %s1956_s13), 15 }
  0x20   : > { %s2753_s26 = scalar_select %p448_p13, %s2594_s20, 12 }
  0x21   : > { %s1953_s12 = sshll.u32 %s3167_s16, 3  ;;  %s1957_s24 = sshll.u32 %s3169_s13, 2  ;;  %v2470_v0 = vld [vmem:[%s3109_s5] sm:$0xff] (!%p1958_p1)   ;;  %v2612_v1 = vmov (!%p1958_p1), 0.0   ;;  %v2472_v3 = vld [vmem:[%s3109_s5 + $0x8] sm:$0xff] (!%p1958_p1)   ;;  %v2474_v5 = vld [vmem:[%s3109_s5 + $0x10] sm:$0xff] (!%p1958_p1)  }
  0x22   : > { %s2759_s23 = scalar_lea.vmem %s3104_s0, %s1953_s12  ;;  %s2764_s19 = scalar_lea.vmem %s3105_s1, %s1953_s12  ;;  %463 = vst [vmem:[#allocation4] sm:$0xff] (!%p1958_p1), %v2612_v1  ;;  %464 = vst [vmem:[#allocation4 + $0x8] sm:$0xff] (!%p1958_p1), %v2612_v1  ;;  %v2471_v2 = vld [vmem:[%s3110_s6] sm:$0xff] (!%p1958_p1)   ;;  %2154 = vmatprep.subr.bf16.mxu0 (!%p1958_p1), %v2470_v0  ;;  %v2473_v4 = vld [vmem:[%s3110_s6 + $0x8] sm:$0xff] (!%p1958_p1)  }
  0x23   : > { %s450_s17 = scalar_lea.vmem %s3106_s2, %s2753_s26  ;;  %s2773_s29 = scalar_lea.vmem %s3108_s4, %s1957_s24  ;;  %465 = vst [vmem:[#allocation4 + $0x10] sm:$0xff] (!%p1958_p1), %v2612_v1  ;;  %466 = vst [vmem:[#allocation4 + $0x18] sm:$0xff] (!%p1958_p1), %v2612_v1  ;;  %2186 = vmatprep.subr.bf16.mxu1 (!%p1958_p1), %v2471_v2  ;;  %2155 = vmatpush3.bf16.msra.mxu0 (!%p1958_p1), %v2470_v0  ;;  %v2475_v6 = vld [vmem:[%s3110_s6 + $0x10] sm:$0xff] (!%p1958_p1)   ;;  %v2476_v7 = vld [vmem:[%s3109_s5 + $0x18] sm:$0xff] (!%p1958_p1)  }
  0x24   : > { %462 = sbr.rel (%p1958_p1) target bundleno = 309 (0x135), region = 68  ;;  %467 = vst [vmem:[#allocation4 + $0x20] sm:$0xff] (!%p1958_p1), %v2612_v1  ;;  %468 = vst [vmem:[#allocation4 + $0x28] sm:$0xff] (!%p1958_p1), %v2612_v1  ;;  %2187 = vmatpush3.bf16.msra.mxu1 (!%p1958_p1), %v2471_v2  ;;  %2156 = vmatprep.subr.bf16.mxu0 (!%p1958_p1), %v2472_v3  ;;  %v2477_v8 = vld [vmem:[%s3110_s6 + $0x18] sm:$0xff] (!%p1958_p1)   ;;  %v2478_v9 = vld [vmem:[%s3109_s5 + $0x20] sm:$0xff] (!%p1958_p1)  }
  0x25   : > { %469 = vst [vmem:[#allocation4 + $0x30] sm:$0xff] (!%p1958_p1), %v2612_v1  ;;  %470 = vst [vmem:[#allocation4 + $0x38] sm:$0xff] (!%p1958_p1), %v2612_v1  ;;  %2188 = vmatprep.subr.bf16.mxu1 (!%p1958_p1), %v2473_v4  ;;  %v2479_v10 = vld [vmem:[%s3110_s6 + $0x20] sm:$0xff] (!%p1958_p1)   ;;  %v2480_v11 = vld [vmem:[%s3109_s5 + $0x28] sm:$0xff] (!%p1958_p1)  }
  0x26   : > { %v2486_v12 = vld [vmem:[%s3107_s3] sm:$0xff] (!%p1958_p1)   ;;  %v2481_v13 = vld [vmem:[%s3110_s6 + $0x28] sm:$0xff] (!%p1958_p1)   ;;  %v2482_v14 = vld [vmem:[%s3109_s5 + $0x30] sm:$0xff] (!%p1958_p1)  }
  0x27   : > { %2157 = vmatpush3.bf16.msra.mxu0 (!%p1958_p1), %v2472_v3  ;;  %2170 = vmatprep.mubr.bf16.mxu0 (!%p1958_p1), %v2486_v12  ;;  %v2483_v15 = vld [vmem:[%s3110_s6 + $0x30] sm:$0xff] (!%p1958_p1)   ;;  %v2484_v16 = vld [vmem:[%s3109_s5 + $0x38] sm:$0xff] (!%p1958_p1)   ;;  %v2487_v18 = vld [vmem:[%s3107_s3 + $0x8] sm:$0xff] (!%p1958_p1)  }
  0x28   : > { %2189 = vmatpush3.bf16.msra.mxu1 (!%p1958_p1), %v2473_v4  ;;  %2158 = vmatprep.subr.bf16.mxu0 (!%p1958_p1), %v2474_v5  ;;  %v2485_v17 = vld [vmem:[%s3110_s6 + $0x38] sm:$0xff] (!%p1958_p1)   ;;  %v2488_v19 = vld [vmem:[%s3107_s3 + $0x10] sm:$0xff] (!%p1958_p1)   ;;  %v2490_v21 = vld [vmem:[%s3107_s3 + $0x20] sm:$0xff] (!%p1958_p1)  }
  0x29   : > { %2190 = vmatprep.subr.bf16.mxu1 (!%p1958_p1), %v2475_v6  ;;  %2202 = vmatprep.mubr.bf16.mxu1 (!%p1958_p1), %v2486_v12  ;;  %v2489_v20 = vld [vmem:[%s3107_s3 + $0x18] sm:$0xff] (!%p1958_p1)   ;;  %v2491_v22 = vld [vmem:[%s3107_s3 + $0x28] sm:$0xff] (!%p1958_p1)   ;;  %v2492_v23 = vld [vmem:[%s3107_s3 + $0x30] sm:$0xff] (!%p1958_p1)  }
  0x2a   : > { %v2493_v24 = vld [vmem:[%s3107_s3 + $0x38] sm:$0xff] (!%p1958_p1)  }
  0x2b   : > { %2159 = vmatpush3.bf16.msra.mxu0 %v2474_v5 }
  0x2c   : > { %2191 = vmatpush3.bf16.msra.mxu1 %v2475_v6  ;;  %2160 = vmatprep.subr.bf16.mxu0 %v2476_v7 }
  0x2d   : > { %2192 = vmatprep.subr.bf16.mxu1 %v2477_v8 }
  0x2f   : > { %2161 = vmatpush3.bf16.msra.mxu0 %v2476_v7 }
  0x30   : > { %2193 = vmatpush3.bf16.msra.mxu1 %v2477_v8  ;;  %2162 = vmatprep.subr.bf16.mxu0 %v2478_v9 }
  0x31   : > { %2194 = vmatprep.subr.bf16.mxu1 %v2479_v10 }
  0x33   : > { %2163 = vmatpush3.bf16.msra.mxu0 %v2478_v9 }
  0x34   : > { %2195 = vmatpush3.bf16.msra.mxu1 %v2479_v10  ;;  %2164 = vmatprep.subr.bf16.mxu0 %v2480_v11 }
  0x35   : > { %2196 = vmatprep.subr.bf16.mxu1 %v2481_v13 }
  0x37   : > { %2165 = vmatpush3.bf16.msra.mxu0 %v2480_v11 }
  0x38   : > { %2197 = vmatpush3.bf16.msra.mxu1 %v2481_v13  ;;  %2166 = vmatprep.subr.bf16.mxu0 %v2482_v14 }
  0x39   : > { %2198 = vmatprep.subr.bf16.mxu1 %v2483_v15 }
  0x3b   : > { %2167 = vmatpush3.bf16.msra.mxu0 %v2482_v14 }
  0x3c   : > { %2199 = vmatpush3.bf16.msra.mxu1 %v2483_v15  ;;  %2168 = vmatprep.subr.bf16.mxu0 %v2484_v16 }
  0x3d   : > { %2200 = vmatprep.subr.bf16.mxu1 %v2485_v17 }
  0x3f   : > { %2169 = vmatpush3.bf16.msra.mxu0 %v2484_v16 }
  0x40   : > { %2201 = vmatpush3.bf16.msra.mxu1 %v2485_v17 }
  0x42   : > { %2171 = vmatmul.mubr.bf16.vlgmr.msra.gmra.mrb[0].mxu0 %v2487_v18 }
  0x43   : > { %2203 = vmatmul.mubr.bf16.vlgmr.msra.gmra.mrb[0].mxu1 %v2487_v18  ;;  %2174 = vmatprep.mubr.bf16.mxu0 %v2488_v19 }
  0x44   : > { %2206 = vmatprep.mubr.bf16.mxu1 %v2488_v19 }
  0x4a   : > { %2175 = vmatmul.mubr.bf16.gmra.mrb[4].mxu0 %v2489_v20 }
  0x4b   : > { %2207 = vmatmul.mubr.bf16.gmra.mrb[4].mxu1 %v2489_v20  ;;  %2178 = vmatprep.mubr.bf16.mxu0 %v2490_v21 }
  0x4c   : > { %2210 = vmatprep.mubr.bf16.mxu1 %v2490_v21 }
  0x52   : > { %2179 = vmatmul.mubr.bf16.gmra.mrb[8].mxu0 %v2491_v22 }
  0x53   : > { %2211 = vmatmul.mubr.bf16.gmra.mrb[8].mxu1 %v2491_v22  ;;  %2182 = vmatprep.mubr.bf16.mxu0 %v2492_v23 }
  0x54   : > { %2214 = vmatprep.mubr.bf16.mxu1 %v2492_v23 }
  0x5a   : > { %2183 = vmatmul.mubr.bf16.gmra.mrb[12].mxu0 %v2493_v24 }
  0x5b   : > { %2215 = vmatmul.mubr.bf16.gmra.mrb[12].mxu1 %v2493_v24 }
 0x115   : > { %v2172_v25 = vpop.f32.mrb[0].mxu0 }
 0x116   : > { %v2204_v26 = vpop.f32.mrb[0].mxu1  ;;  %v633_v27 = vpop.f32.mrb[1].mxu0 }
 0x117   : > { %v810_v28 = vpop.f32.mrb[1].mxu1  ;;  %v2173_v29 = vpop.f32.mrb[2].mxu0 }
 0x118   : > { %v697_v30 = vpack.c.bf16 %v2173_v29, %v2172_v25  ;;  %v2205_v31 = vpop.f32.mrb[2].mxu1  ;;  %v636_v32 = vpop.f32.mrb[3].mxu0 }
 0x119   : > { %v874_v33 = vpack.c.bf16 %v2205_v31, %v2204_v26  ;;  %v696_v34 = vpack.c.bf16 %v636_v32, %v633_v27  ;;  %v813_v35 = vpop.f32.mrb[3].mxu1 }
 0x11a   : > { %705 = vst [vmem:[#allocation2 + $0x8] sm:$0xff] %v697_v30  ;;  %v873_v36 = vpack.c.bf16 %v813_v35, %v810_v28 }
 0x11b   : > { %882 = vst [vmem:[#allocation3 + $0x8] sm:$0xff] %v874_v33  ;;  %704 = vst [vmem:[#allocation2] sm:$0xff] %v696_v34 }
 0x11c   : > { %881 = vst [vmem:[#allocation3] sm:$0xff] %v873_v36 }
 0x11d   : > { %v2176_v37 = vpop.f32.mrb[4].mxu0 }
 0x11e   : > { %v2208_v38 = vpop.f32.mrb[4].mxu1  ;;  %v649_v39 = vpop.f32.mrb[5].mxu0 }
 0x11f   : > { %v826_v40 = vpop.f32.mrb[5].mxu1  ;;  %v2177_v41 = vpop.f32.mrb[6].mxu0 }
 0x120   : > { %v699_v42 = vpack.c.bf16 %v2177_v41, %v2176_v37  ;;  %v2209_v43 = vpop.f32.mrb[6].mxu1  ;;  %v652_v44 = vpop.f32.mrb[7].mxu0 }
 0x121   : > { %v876_v45 = vpack.c.bf16 %v2209_v43, %v2208_v38  ;;  %v698_v46 = vpack.c.bf16 %v652_v44, %v649_v39  ;;  %v829_v47 = vpop.f32.mrb[7].mxu1 }
 0x122   : > { %707 = vst [vmem:[#allocation2 + $0x18] sm:$0xff] %v699_v42  ;;  %v875_v48 = vpack.c.bf16 %v829_v47, %v826_v40 }
 0x123   : > { %884 = vst [vmem:[#allocation3 + $0x18] sm:$0xff] %v876_v45  ;;  %706 = vst [vmem:[#allocation2 + $0x10] sm:$0xff] %v698_v46 }
 0x124   : > { %883 = vst [vmem:[#allocation3 + $0x10] sm:$0xff] %v875_v48 }
 0x125   : > { %v2180_v49 = vpop.f32.mrb[8].mxu0 }
 0x126   : > { %v2212_v50 = vpop.f32.mrb[8].mxu1  ;;  %v665_v51 = vpop.f32.mrb[9].mxu0 }
 0x127   : > { %v842_v52 = vpop.f32.mrb[9].mxu1  ;;  %v2181_v53 = vpop.f32.mrb[10].mxu0 }
 0x128   : > { %v701_v54 = vpack.c.bf16 %v2181_v53, %v2180_v49  ;;  %v2213_v55 = vpop.f32.mrb[10].mxu1  ;;  %v668_v56 = vpop.f32.mrb[11].mxu0 }
 0x129   : > { %v878_v57 = vpack.c.bf16 %v2213_v55, %v2212_v50  ;;  %v700_v58 = vpack.c.bf16 %v668_v56, %v665_v51  ;;  %v845_v59 = vpop.f32.mrb[11].mxu1 }
 0x12a   : > { %709 = vst [vmem:[#allocation2 + $0x28] sm:$0xff] %v701_v54  ;;  %v877_v60 = vpack.c.bf16 %v845_v59, %v842_v52 }
 0x12b   : > { %886 = vst [vmem:[#allocation3 + $0x28] sm:$0xff] %v878_v57  ;;  %708 = vst [vmem:[#allocation2 + $0x20] sm:$0xff] %v700_v58 }
 0x12c   : > { %885 = vst [vmem:[#allocation3 + $0x20] sm:$0xff] %v877_v60 }
 0x12d   : > { %v2184_v61 = vpop.f32.mrb[12].mxu0 }
 0x12e   : > { %v2216_v62 = vpop.f32.mrb[12].mxu1  ;;  %v681_v63 = vpop.f32.mrb[13].mxu0 }
 0x12f   : > { %v858_v0 = vpop.f32.mrb[13].mxu1  ;;  %v2185_v1 = vpop.f32.mrb[14].mxu0 }
 0x130   : > { %v703_v2 = vpack.c.bf16 %v2185_v1, %v2184_v61  ;;  %v2217_v3 = vpop.f32.mrb[14].mxu1  ;;  %v684_v4 = vpop.f32.mrb[15].mxu0 }
 0x131   : > { %v880_v5 = vpack.c.bf16 %v2217_v3, %v2216_v62  ;;  %v702_v6 = vpack.c.bf16 %v684_v4, %v681_v63  ;;  %v861_v7 = vpop.f32.mrb[15].mxu1 }
 0x132   : > { %711 = vst [vmem:[#allocation2 + $0x38] sm:$0xff] %v703_v2  ;;  %v879_v8 = vpack.c.bf16 %v861_v7, %v858_v0 }
 0x133   : > { %888 = vst [vmem:[#allocation3 + $0x38] sm:$0xff] %v880_v5  ;;  %710 = vst [vmem:[#allocation2 + $0x30] sm:$0xff] %v702_v6 }
 0x134   : > { %887 = vst [vmem:[#allocation3 + $0x30] sm:$0xff] %v879_v8 }
 0x135 PF: > { %v905_v9 = vld [vmem:[%s2764_s19] sm:$0xff]  ;;  %v2613_v11 = vmov 0   ;;  %v906_v12 = vld [vmem:[%s2764_s19 + $0x8] sm:$0xff]  ;;  %v892_v14 = vld [vmem:[%s2759_s23 + $0x18] sm:$0xff]  ;;  %v921_v58 = vlaneseq  ;;  %v2614_v0 = vmov 1.0|1.0  }
 0x136   : > { %v889_v10 = vld [vmem:[%s2759_s23] sm:$0xff]  ;;  %2495 = vset.pattern.permute.xlu1 %v2613_v11  ;;  %2494 = vset.pattern.permute.xlu0 %v2613_v11  ;;  %v890_v13 = vld [vmem:[%s2759_s23 + $0x8] sm:$0xff]  ;;  %v891_v15 = vld [vmem:[%s2759_s23 + $0x10] sm:$0xff]  ;;  %p2026_p2 = scmp.ne.s32.totalorder %s2594_s20, 12 }
 0x137   : > { %1012 = vperm.xlu1 %2495, %v905_v9   ;;  %924 = vperm.xlu0 %2494, %v889_v10   ;;  %v908_v16 = vld [vmem:[%s2764_s19 + $0x18] sm:$0xff]  ;;  %v1099_v17 = vld [vmem:[#allocation2] sm:$0xff]  ;;  %v907_v18 = vld [vmem:[%s2764_s19 + $0x10] sm:$0xff]  ;;  %v2883_v61 = vand.u32 127, %v921_v58 }
 0x138   : > { %2250 = vmatprep.subr.bf16.mxu0 %v1099_v17  ;;  %v1107_v19 = vld [vmem:[#allocation3] sm:$0xff]  ;;  %v1100_v20 = vld [vmem:[#allocation2 + $0x8] sm:$0xff]  ;;  %v1101_v22 = vld [vmem:[#allocation2 + $0x10] sm:$0xff] }
 0x139   : > { %2251 = vmatpush3.bf16.msra.mxu0 %v1099_v17  ;;  %2218 = vmatprep.subr.bf16.mxu1 %v1107_v19  ;;  %v1108_v21 = vld [vmem:[#allocation3 + $0x8] sm:$0xff]  ;;  %v893_v24 = vld [vmem:[%s2759_s23 + $0x20] sm:$0xff]  ;;  %v1109_v25 = vld [vmem:[#allocation3 + $0x10] sm:$0xff] }
 0x13a   : > { %2252 = vmatprep.subr.bf16.mxu0 %v1100_v20  ;;  %2219 = vmatpush3.bf16.msra.mxu1 %v1107_v19  ;;  %v894_v23 = vld [vmem:[%s2759_s23 + $0x28] sm:$0xff]  ;;  %v1102_v26 = vld [vmem:[#allocation2 + $0x18] sm:$0xff]  ;;  %v909_v28 = vld [vmem:[%s2764_s19 + $0x20] sm:$0xff] }
 0x13b   : > { %1015 = vperm.xlu1 %2495, %v906_v12   ;;  %927 = vperm.xlu0 %2494, %v890_v13   ;;  %v910_v27 = vld [vmem:[%s2764_s19 + $0x28] sm:$0xff]  ;;  %v1110_v29 = vld [vmem:[#allocation3 + $0x18] sm:$0xff]  ;;  %v1103_v30 = vld [vmem:[#allocation2 + $0x20] sm:$0xff] }
 0x13c   : > { %2220 = vmatprep.subr.bf16.mxu1 %v1108_v21  ;;  %v896_v31 = vld [vmem:[%s2759_s23 + $0x38] sm:$0xff]  ;;  %v895_v32 = vld [vmem:[%s2759_s23 + $0x30] sm:$0xff]  ;;  %v1111_v33 = vld [vmem:[#allocation3 + $0x20] sm:$0xff] }
 0x13d   : > { %2253 = vmatpush3.bf16.msra.mxu0 %v1100_v20  ;;  %v1104_v34 = vld [vmem:[#allocation2 + $0x28] sm:$0xff]  ;;  %v912_v35 = vld [vmem:[%s2764_s19 + $0x38] sm:$0xff]  ;;  %v911_v36 = vld [vmem:[%s2764_s19 + $0x30] sm:$0xff] }
 0x13e   : > { %2254 = vmatprep.subr.bf16.mxu0 %v1101_v22  ;;  %2221 = vmatpush3.bf16.msra.mxu1 %v1108_v21  ;;  %v1112_v37 = vld [vmem:[#allocation3 + $0x28] sm:$0xff]  ;;  %v1105_v38 = vld [vmem:[#allocation2 + $0x30] sm:$0xff]  ;;  %v897_v40 = vld [vmem:[%s2759_s23 + $0x40] sm:$0xff] }
 0x13f   : > { %933 = vperm.xlu1 %2495, %v892_v14   ;;  %930 = vperm.xlu0 %2494, %v891_v15   ;;  %v898_v39 = vld [vmem:[%s2759_s23 + $0x48] sm:$0xff]  ;;  %v1113_v41 = vld [vmem:[#allocation3 + $0x30] sm:$0xff]  ;;  %v1106_v42 = vld [vmem:[#allocation2 + $0x38] sm:$0xff] }
 0x140   : > { %2222 = vmatprep.subr.bf16.mxu1 %v1109_v25  ;;  %v914_v43 = vld [vmem:[%s2764_s19 + $0x48] sm:$0xff]  ;;  %v913_v44 = vld [vmem:[%s2764_s19 + $0x40] sm:$0xff]  ;;  %v1114_v45 = vld [vmem:[#allocation3 + $0x38] sm:$0xff] }
 0x141   : > { %2255 = vmatpush3.bf16.msra.mxu0 %v1101_v22  ;;  %v900_v46 = vld [vmem:[%s2759_s23 + $0x58] sm:$0xff]  ;;  %v899_v47 = vld [vmem:[%s2759_s23 + $0x50] sm:$0xff]  ;;  %v902_v50 = vld [vmem:[%s2759_s23 + $0x68] sm:$0xff] }
 0x142   : > { %2256 = vmatprep.subr.bf16.mxu0 %v1102_v26  ;;  %2223 = vmatpush3.bf16.msra.mxu1 %v1109_v25  ;;  %v916_v48 = vld [vmem:[%s2764_s19 + $0x58] sm:$0xff]  ;;  %v915_v49 = vld [vmem:[%s2764_s19 + $0x50] sm:$0xff]  ;;  %v901_v51 = vld [vmem:[%s2759_s23 + $0x60] sm:$0xff] }
 0x143   : > { %1021 = vperm.xlu1 %2495, %v908_v16   ;;  %1018 = vperm.xlu0 %2494, %v907_v18   ;;  %v918_v52 = vld [vmem:[%s2764_s19 + $0x68] sm:$0xff]  ;;  %v917_v53 = vld [vmem:[%s2764_s19 + $0x60] sm:$0xff]  ;;  %v904_v54 = vld [vmem:[%s2759_s23 + $0x78] sm:$0xff] }
 0x144   : > { %2224 = vmatprep.subr.bf16.mxu1 %v1110_v29  ;;  %v903_v55 = vld [vmem:[%s2759_s23 + $0x70] sm:$0xff]  ;;  %v920_v56 = vld [vmem:[%s2764_s19 + $0x78] sm:$0xff] }
 0x145   : > { %2257 = vmatpush3.bf16.msra.mxu0 %v1102_v26  ;;  %v919_v57 = vld [vmem:[%s2764_s19 + $0x70] sm:$0xff]  ;;  %s2016_s19 = sshll.u32 %s2598_s21, 6 }
 0x146   : > { %2258 = vmatprep.subr.bf16.mxu0 %v1103_v30  ;;  %2225 = vmatpush3.bf16.msra.mxu1 %v1110_v29  ;;  %v1350_v29 = vshrl.u32 %v921_v58, 7 }
 0x147   : > { %939 = vperm.xlu1 %2495, %v894_v23   ;;  %936 = vperm.xlu0 %2494, %v893_v24  }
 0x148   : > { %2226 = vmatprep.subr.bf16.mxu1 %v1111_v33 }
 0x149   : > { %2259 = vmatpush3.bf16.msra.mxu0 %v1103_v30  ;;  %v1351_v30 = vadd.s32 8, %v1350_v29 }
 0x14a   : > { %2260 = vmatprep.subr.bf16.mxu0 %v1104_v34  ;;  %2227 = vmatpush3.bf16.msra.mxu1 %v1111_v33  ;;  %v1359_v33 = vstv %s2016_s19 }
 0x14b   : > { %1027 = vperm.xlu1 %2495, %v910_v27   ;;  %1024 = vperm.xlu0 %2494, %v909_v28  }
 0x14c   : > { %2228 = vmatprep.subr.bf16.mxu1 %v1112_v37 }
 0x14d   : > { %2261 = vmatpush3.bf16.msra.mxu0 %v1104_v34  ;;  %v1352_v34 = vadd.s32 16, %v1350_v29 }
 0x14e   : > { %2262 = vmatprep.subr.bf16.mxu0 %v1105_v38  ;;  %2229 = vmatpush3.bf16.msra.mxu1 %v1112_v37  ;;  %v1360_v37 = vadd.s32 %v1359_v33, %v1350_v29 }
 0x14f   : > { %945 = vperm.xlu1 %2495, %v896_v31   ;;  %942 = vperm.xlu0 %2494, %v895_v32   ;;  %v1354_v31 = vadd.s32 32, %v1350_v29  ;;  %v1355_v32 = vadd.s32 40, %v1350_v29 }
 0x150   : > { %2230 = vmatprep.subr.bf16.mxu1 %v1113_v41 }
 0x151   : > { %2263 = vmatpush3.bf16.msra.mxu0 %v1105_v38  ;;  %v1361_v38 = vadd.s32 %v1359_v33, %v1351_v30 }
 0x152   : > { %2264 = vmatprep.subr.bf16.mxu0 %v1106_v42  ;;  %2231 = vmatpush3.bf16.msra.mxu1 %v1113_v41  ;;  %v2017_v41 = vld [vmem:[%s450_s17] ss:$0 sm:$0xff] }
 0x153   : > { %1033 = vperm.xlu1 %2495, %v912_v35   ;;  %1030 = vperm.xlu0 %2494, %v911_v36   ;;  %v1353_v35 = vadd.s32 24, %v1350_v29  ;;  %v1356_v36 = vadd.s32 48, %v1350_v29 }
 0x154   : > { %2232 = vmatprep.subr.bf16.mxu1 %v1114_v45 }
 0x155   : > { %2265 = vmatpush3.bf16.msra.mxu0 %v1106_v42  ;;  %v1362_v42 = vadd.s32 %v1359_v33, %v1352_v34 }
 0x156   : > { %2233 = vmatpush3.bf16.msra.mxu1 %v1114_v45  ;;  %v1366_v45 = vadd.s32 %v1359_v33, %v1356_v36 }
 0x157   : > { %951 = vperm.xlu1 %2495, %v898_v39   ;;  %948 = vperm.xlu0 %2494, %v897_v40   ;;  %v1364_v39 = vadd.s32 %v1359_v33, %v1354_v31  ;;  %v1365_v40 = vadd.s32 %v1359_v33, %v1355_v32 }
 0x15b   : > { %1039 = vperm.xlu1 %2495, %v914_v43   ;;  %1036 = vperm.xlu0 %2494, %v913_v44   ;;  %v1363_v43 = vadd.s32 %v1359_v33, %v1353_v35  ;;  %v1357_v44 = vadd.s32 56, %v1350_v29 }
 0x15f   : > { %957 = vperm.xlu1 %2495, %v900_v46   ;;  %954 = vperm.xlu0 %2494, %v899_v47   ;;  %v1367_v46 = vadd.s32 %v1359_v33, %v1357_v44 }
 0x163   : > { %1045 = vperm.xlu1 %2495, %v916_v48   ;;  %1042 = vperm.xlu0 %2494, %v915_v49  }
 0x167   : > { %963 = vperm.xlu1 %2495, %v902_v50   ;;  %960 = vperm.xlu0 %2494, %v901_v51  }
 0x16b   : > { %1051 = vperm.xlu1 %2495, %v918_v52   ;;  %1048 = vperm.xlu0 %2494, %v917_v53  }
 0x16f   : > { %969 = vperm.xlu1 %2495, %v904_v54   ;;  %966 = vperm.xlu0 %2494, %v903_v55   ;;  %v2953_v54 = vld [vmem:[%s3111_s7] ss:$0 sm:$0xff] }
 0x173   : > { %1057 = vperm.xlu1 %2495, %v920_v56   ;;  %1054 = vperm.xlu0 %2494, %v919_v57  }
 0x1b6   : > { %v1013_v59 = vpop.permute.xlu1 %1012  ;;  %v925_v60 = vpop.permute.xlu0 %924 }
 0x1b7   : > { %vm1059_vm0 = vcmp.eq.s32.totalorder %v2883_v61, %v1013_v59  ;;  %vm971_vm3 = vcmp.eq.s32.totalorder %v2883_v61, %v925_v60 }
 0x1ba   : > { %v1016_v62 = vpop.permute.xlu1 %1015  ;;  %v928_v63 = vpop.permute.xlu0 %927 }
 0x1bb   : > { %vm1060_vm1 = vcmp.eq.s32.totalorder %v2883_v61, %v1016_v62  ;;  %vm972_vm2 = vcmp.eq.s32.totalorder %v2883_v61, %v928_v63 }
 0x1bc   : > { %vm1983_vm4 = vmpackc.low %vm1060_vm1, %vm1059_vm0 }
 0x1bd   : > { %2234 = vmatprep.mubr.msk.bf16.mxu1 %vm1983_vm4, %v2614_v0  ;;  %vm1999_vm5 = vmpackc.low %vm972_vm2, %vm971_vm3 }
 0x1be   : > { %2266 = vmatprep.mubr.msk.bf16.mxu0 %vm1999_vm5, %v2614_v0  ;;  %v934_v1 = vpop.permute.xlu1 %933  ;;  %v931_v2 = vpop.permute.xlu0 %930 }
 0x1bf   : > { %vm974_vm6 = vcmp.eq.s32.totalorder %v2883_v61, %v934_v1  ;;  %vm973_vm7 = vcmp.eq.s32.totalorder %v2883_v61, %v931_v2 }
 0x1c0   : > { %vm2001_vm8 = vmpackc.low %vm974_vm6, %vm973_vm7 }
 0x1c1   : > { %2267 = vmatmul.mubr.msk.bf16.vlgmr.msra.gmra.mrb[0].mxu0 %vm2001_vm8, %v2614_v0 }
 0x1c2   : > { %v1022_v3 = vpop.permute.xlu1 %1021  ;;  %v1019_v4 = vpop.permute.xlu0 %1018 }
 0x1c3   : > { %vm1062_vm9 = vcmp.eq.s32.totalorder %v2883_v61, %v1022_v3  ;;  %vm1061_vm10 = vcmp.eq.s32.totalorder %v2883_v61, %v1019_v4 }
 0x1c4   : > { %vm1985_vm11 = vmpackc.low %vm1062_vm9, %vm1061_vm10 }
 0x1c5   : > { %2235 = vmatmul.mubr.msk.bf16.vlgmr.msra.gmra.mrb[0].mxu1 %vm1985_vm11, %v2614_v0 }
 0x1c6   : > { %v940_v5 = vpop.permute.xlu1 %939  ;;  %v937_v6 = vpop.permute.xlu0 %936 }
 0x1c7   : > { %vm976_vm12 = vcmp.eq.s32.totalorder %v2883_v61, %v940_v5  ;;  %vm975_vm13 = vcmp.eq.s32.totalorder %v2883_v61, %v937_v6 }
 0x1c8   : > { %vm2003_vm14 = vmpackc.low %vm976_vm12, %vm975_vm13 }
 0x1c9   : > { %2270 = vmatprep.mubr.msk.bf16.mxu0 %vm2003_vm14, %v2614_v0 }
 0x1ca   : > { %v1028_v7 = vpop.permute.xlu1 %1027  ;;  %v1025_v8 = vpop.permute.xlu0 %1024 }
 0x1cb   : > { %vm1064_vm15 = vcmp.eq.s32.totalorder %v2883_v61, %v1028_v7  ;;  %vm1063_vm0 = vcmp.eq.s32.totalorder %v2883_v61, %v1025_v8 }
 0x1cc   : > { %vm1987_vm1 = vmpackc.low %vm1064_vm15, %vm1063_vm0 }
 0x1cd   : > { %2238 = vmatprep.mubr.msk.bf16.mxu1 %vm1987_vm1, %v2614_v0 }
 0x1ce   : > { %v946_v9 = vpop.permute.xlu1 %945  ;;  %v943_v10 = vpop.permute.xlu0 %942 }
 0x1cf   : > { %vm978_vm2 = vcmp.eq.s32.totalorder %v2883_v61, %v946_v9  ;;  %vm977_vm3 = vcmp.eq.s32.totalorder %v2883_v61, %v943_v10 }
 0x1d0   : > { %vm2005_vm4 = vmpackc.low %vm978_vm2, %vm977_vm3 }
 0x1d1   : > { %2271 = vmatmul.mubr.msk.bf16.gmra.mrb[4].mxu0 %vm2005_vm4, %v2614_v0 }
 0x1d2   : > { %v1034_v11 = vpop.permute.xlu1 %1033  ;;  %v1031_v12 = vpop.permute.xlu0 %1030 }
 0x1d3   : > { %vm1066_vm5 = vcmp.eq.s32.totalorder %v2883_v61, %v1034_v11  ;;  %vm1065_vm6 = vcmp.eq.s32.totalorder %v2883_v61, %v1031_v12 }
 0x1d4   : > { %vm1989_vm7 = vmpackc.low %vm1066_vm5, %vm1065_vm6 }
 0x1d5   : > { %2239 = vmatmul.mubr.msk.bf16.gmra.mrb[4].mxu1 %vm1989_vm7, %v2614_v0 }
 0x1d6   : > { %v952_v13 = vpop.permute.xlu1 %951  ;;  %v949_v14 = vpop.permute.xlu0 %948 }
 0x1d7   : > { %vm980_vm8 = vcmp.eq.s32.totalorder %v2883_v61, %v952_v13  ;;  %vm979_vm9 = vcmp.eq.s32.totalorder %v2883_v61, %v949_v14 }
 0x1d8   : > { %vm2007_vm10 = vmpackc.low %vm980_vm8, %vm979_vm9 }
 0x1d9   : > { %2274 = vmatprep.mubr.msk.bf16.mxu0 %vm2007_vm10, %v2614_v0 }
 0x1da   : > { %v1040_v15 = vpop.permute.xlu1 %1039  ;;  %v1037_v16 = vpop.permute.xlu0 %1036 }
 0x1db   : > { %vm1068_vm11 = vcmp.eq.s32.totalorder %v2883_v61, %v1040_v15  ;;  %vm1067_vm12 = vcmp.eq.s32.totalorder %v2883_v61, %v1037_v16 }
 0x1dc   : > { %vm1991_vm13 = vmpackc.low %vm1068_vm11, %vm1067_vm12 }
 0x1dd   : > { %2242 = vmatprep.mubr.msk.bf16.mxu1 %vm1991_vm13, %v2614_v0 }
 0x1de   : > { %v958_v17 = vpop.permute.xlu1 %957  ;;  %v955_v18 = vpop.permute.xlu0 %954 }
 0x1df   : > { %vm982_vm14 = vcmp.eq.s32.totalorder %v2883_v61, %v958_v17  ;;  %vm981_vm15 = vcmp.eq.s32.totalorder %v2883_v61, %v955_v18 }
 0x1e0   : > { %vm2009_vm0 = vmpackc.low %vm982_vm14, %vm981_vm15 }
 0x1e1   : > { %2275 = vmatmul.mubr.msk.bf16.gmra.mrb[8].mxu0 %vm2009_vm0, %v2614_v0  ;;  %vm1372_vm0 = vcmp.eq.s32.totalorder %v1360_v37, %v2017_v41 }
 0x1e2   : > { %v1046_v19 = vpop.permute.xlu1 %1045  ;;  %v1043_v20 = vpop.permute.xlu0 %1042 }
 0x1e3   : > { %vm1070_vm1 = vcmp.eq.s32.totalorder %v2883_v61, %v1046_v19  ;;  %vm1069_vm2 = vcmp.eq.s32.totalorder %v2883_v61, %v1043_v20 }
 0x1e4   : > { %vm1993_vm3 = vmpackc.low %vm1070_vm1, %vm1069_vm2  ;;  %vm1373_vm1 = vcmp.eq.s32.totalorder %v1361_v38, %v2017_v41  ;;  %vm1376_vm2 = vcmp.eq.s32.totalorder %v1364_v39, %v2017_v41 }
 0x1e5   : > { %2243 = vmatmul.mubr.msk.bf16.gmra.mrb[8].mxu1 %vm1993_vm3, %v2614_v0  ;;  %vm1377_vm3 = vcmp.eq.s32.totalorder %v1365_v40, %v2017_v41 }
 0x1e6   : > { %v964_v21 = vpop.permute.xlu1 %963  ;;  %v961_v22 = vpop.permute.xlu0 %960 }
 0x1e7   : > { %vm984_vm4 = vcmp.eq.s32.totalorder %v2883_v61, %v964_v21  ;;  %vm983_vm5 = vcmp.eq.s32.totalorder %v2883_v61, %v961_v22 }
 0x1e8   : > { %vm2011_vm6 = vmpackc.low %vm984_vm4, %vm983_vm5  ;;  %vm1374_vm5 = vcmp.eq.s32.totalorder %v1362_v42, %v2017_v41 }
 0x1e9   : > { %2278 = vmatprep.mubr.msk.bf16.mxu0 %vm2011_vm6, %v2614_v0  ;;  %vm2018_vm4 = vmpackc.low %vm1373_vm1, %vm1372_vm0  ;;  %vm1375_vm6 = vcmp.eq.s32.totalorder %v1363_v43, %v2017_v41 }
 0x1ea   : > { %v1052_v23 = vpop.permute.xlu1 %1051  ;;  %v1049_v24 = vpop.permute.xlu0 %1048 }
 0x1eb   : > { %vm1072_vm7 = vcmp.eq.s32.totalorder %v2883_v61, %v1052_v23  ;;  %vm1071_vm8 = vcmp.eq.s32.totalorder %v2883_v61, %v1049_v24 }
 0x1ec   : > { %vm1995_vm9 = vmpackc.low %vm1072_vm7, %vm1071_vm8  ;;  %vm1378_vm7 = vcmp.eq.s32.totalorder %v1366_v45, %v2017_v41 }
 0x1ed   : > { %2246 = vmatprep.mubr.msk.bf16.mxu1 %vm1995_vm9, %v2614_v0  ;;  %vm2022_vm8 = vmpackc.low %vm1377_vm3, %vm1376_vm2 }
 0x1ee   : > { %v970_v25 = vpop.permute.xlu1 %969  ;;  %v967_v26 = vpop.permute.xlu0 %966  ;;  %vm2942_vm9 = vmpackc.low %vm1375_vm6, %vm1374_vm5 }
 0x1ef   : > { %vm986_vm10 = vcmp.eq.s32.totalorder %v2883_v61, %v970_v25  ;;  %vm985_vm11 = vcmp.eq.s32.totalorder %v2883_v61, %v967_v26 }
 0x1f0   : > { %vm2013_vm12 = vmpackc.low %vm986_vm10, %vm985_vm11  ;;  %vm1379_vm10 = vcmp.eq.s32.totalorder %v1367_v46, %v2017_v41 }
 0x1f1   : > { %2279 = vmatmul.mubr.msk.bf16.gmra.mrb[12].mxu0 %vm2013_vm12, %v2614_v0  ;;  %vm2946_vm11 = vmpackc.low %vm1379_vm10, %vm1378_vm7 }
 0x1f2   : > { %v1058_v27 = vpop.permute.xlu1 %1057  ;;  %v1055_v28 = vpop.permute.xlu0 %1054  ;;  %2298 = vmatprep.mubr.msk.bf16.mxu0 %vm2018_vm4, %v2614_v0 }
 0x1f3   : > { %vm1074_vm13 = vcmp.eq.s32.totalorder %v2883_v61, %v1058_v27  ;;  %vm1073_vm14 = vcmp.eq.s32.totalorder %v2883_v61, %v1055_v28 }
 0x1f4   : > { %vm1997_vm15 = vmpackc.low %vm1074_vm13, %vm1073_vm14 }
 0x1f5   : > { %2247 = vmatmul.mubr.msk.bf16.gmra.mrb[12].mxu1 %vm1997_vm15, %v2614_v0 }
 0x1f6   : > { %2302 = vmatprep.mubr.msk.bf16.mxu1 %vm2022_vm8, %v2614_v0 }
 0x294   : > { %v2268_v49 = vpop.f32.mrb[0].mxu0 }
 0x295   : > { %v1246_v50 = vpop.f32.mrb[1].mxu0 }
 0x296   : > { %v2269_v51 = vpop.f32.mrb[2].mxu0 }
 0x297   : > { %v1249_v52 = vpop.f32.mrb[3].mxu0 }
 0x298   : > { %v2236_v53 = vpop.f32.mrb[0].mxu1 }
 0x299   : > { %v1255_v55 = vadd.f32 %v2268_v49, %v2236_v53  ;;  %v1149_v56 = vpop.f32.mrb[1].mxu1 }
 0x29a   : > { %v1247_v57 = vadd.f32 %v1246_v50, %v1149_v56  ;;  %v2237_v58 = vpop.f32.mrb[2].mxu1 }
 0x29b   : > { %v1318_v59 = vadd.f32 %v2953_v54, %v1255_v55  ;;  %v1258_v60 = vadd.f32 %v2269_v51, %v2237_v58  ;;  %v1152_v61 = vpop.f32.mrb[3].mxu1 }
 0x29c   : > { %v1316_v62 = vadd.f32 %v2953_v54, %v1247_v57  ;;  %v1250_v63 = vadd.f32 %v1249_v52, %v1152_v61 }
 0x29d   : > { %v1319_v1 = vadd.f32 %v2953_v54, %v1258_v60  ;;  %v1334_v3 = vmax.f32 %v1318_v59, 0.0 }
 0x29e   : > { %v1317_v2 = vadd.f32 %v2953_v54, %v1250_v63  ;;  %v1332_v5 = vmax.f32 %v1316_v62, 0.0 }
 0x29f   : > { %v1335_v4 = vmax.f32 %v1319_v1, 0.0 }
 0x2a0   : > { %v1333_v6 = vmax.f32 %v1317_v2, 0.0 }
 0x2a1   : > { %v1401_v7 = vpack.c.bf16 %v1335_v4, %v1334_v3 }
 0x2a2   : > { %v1400_v8 = vpack.c.bf16 %v1333_v6, %v1332_v5 }
 0x2a4   : > { %v2272_v9 = vpop.f32.mrb[4].mxu0  ;;  %2282 = vmatprep.subr.bf16.mxu0 %v1400_v8  ;;  %2354 = vmatprep.subr.bf16.mxu1 %v1400_v8 }
 0x2a5   : > { %v1262_v10 = vpop.f32.mrb[5].mxu0  ;;  %2283 = vmatpush3.bf16.msra.mxu0 %v1400_v8  ;;  %2362 = vmatpush3.bf16.msra.mxu1 %v1400_v8 }
 0x2a6   : > { %v2273_v11 = vpop.f32.mrb[6].mxu0  ;;  %2284 = vmatprep.subr.bf16.mxu0 %v1401_v7  ;;  %2355 = vmatprep.subr.bf16.mxu1 %v1401_v7 }
 0x2a7   : > { %v1265_v12 = vpop.f32.mrb[7].mxu0 }
 0x2a8   : > { %v2240_v13 = vpop.f32.mrb[4].mxu1 }
 0x2a9   : > { %v1271_v14 = vadd.f32 %v2272_v9, %v2240_v13  ;;  %v1165_v15 = vpop.f32.mrb[5].mxu1  ;;  %2285 = vmatpush3.bf16.msra.mxu0 %v1401_v7  ;;  %2363 = vmatpush3.bf16.msra.mxu1 %v1401_v7 }
 0x2aa   : > { %v1263_v16 = vadd.f32 %v1262_v10, %v1165_v15  ;;  %v2241_v17 = vpop.f32.mrb[6].mxu1  ;;  %v1398_v15 = vld [vmem:[#allocation4 + $0x30] sm:$0xff] }
 0x2ab   : > { %v1322_v18 = vadd.f32 %v2953_v54, %v1271_v14  ;;  %v1274_v19 = vadd.f32 %v2273_v11, %v2241_v17  ;;  %v1168_v20 = vpop.f32.mrb[7].mxu1  ;;  %v1396_v17 = vld [vmem:[#allocation4 + $0x20] sm:$0xff] }
 0x2ac   : > { %v1320_v21 = vadd.f32 %v2953_v54, %v1263_v16  ;;  %v1266_v22 = vadd.f32 %v1265_v12, %v1168_v20  ;;  %v1392_v16 = vld [vmem:[#allocation4] sm:$0xff]  ;;  %v1395_v20 = vld [vmem:[#allocation4 + $0x18] sm:$0xff] }
 0x2ad   : > { %v1323_v23 = vadd.f32 %v2953_v54, %v1274_v19  ;;  %v1338_v25 = vmax.f32 %v1322_v18, 0.0 }
 0x2ae   : > { %v1321_v24 = vadd.f32 %v2953_v54, %v1266_v22  ;;  %v1336_v27 = vmax.f32 %v1320_v21, 0.0  ;;  %v1399_v21 = vld [vmem:[#allocation4 + $0x38] sm:$0xff] }
 0x2af   : > { %v1339_v26 = vmax.f32 %v1323_v23, 0.0 }
 0x2b0   : > { %v1337_v28 = vmax.f32 %v1321_v24, 0.0 }
 0x2b1   : > { %v1403_v29 = vpack.c.bf16 %v1339_v26, %v1338_v25  ;;  %v1393_v26 = vld [vmem:[#allocation4 + $0x8] sm:$0xff] }
 0x2b2   : > { %v1402_v30 = vpack.c.bf16 %v1337_v28, %v1336_v27  ;;  %v1397_v27 = vld [vmem:[#allocation4 + $0x28] sm:$0xff] }
 0x2b4   : > { %v2276_v31 = vpop.f32.mrb[8].mxu0  ;;  %2286 = vmatprep.subr.bf16.mxu0 %v1402_v30  ;;  %2356 = vmatprep.subr.bf16.mxu1 %v1402_v30 }
 0x2b5   : > { %v1278_v32 = vpop.f32.mrb[9].mxu0  ;;  %2287 = vmatpush3.bf16.msra.mxu0 %v1402_v30  ;;  %2364 = vmatpush3.bf16.msra.mxu1 %v1402_v30 }
 0x2b6   : > { %v2277_v33 = vpop.f32.mrb[10].mxu0  ;;  %2288 = vmatprep.subr.bf16.mxu0 %v1403_v29  ;;  %2357 = vmatprep.subr.bf16.mxu1 %v1403_v29 }
 0x2b7   : > { %v1281_v34 = vpop.f32.mrb[11].mxu0 }
 0x2b8   : > { %v2244_v35 = vpop.f32.mrb[8].mxu1 }
 0x2b9   : > { %v1287_v36 = vadd.f32 %v2276_v31, %v2244_v35  ;;  %v1181_v37 = vpop.f32.mrb[9].mxu1  ;;  %2289 = vmatpush3.bf16.msra.mxu0 %v1403_v29  ;;  %2365 = vmatpush3.bf16.msra.mxu1 %v1403_v29  ;;  %v2496_v35 = vld [vmem:[%s3113_s9] sm:$0xff] (!%p2026_p2)  }
 0x2ba   : > { %v1279_v38 = vadd.f32 %v1278_v32, %v1181_v37  ;;  %v2245_v39 = vpop.f32.mrb[10].mxu1  ;;  %v2498_v37 = vld [vmem:[%s3113_s9 + $0x8] sm:$0xff] (!%p2026_p2)  }
 0x2bb   : > { %v1326_v40 = vadd.f32 %v2953_v54, %v1287_v36  ;;  %v1290_v41 = vadd.f32 %v2277_v33, %v2245_v39  ;;  %v1184_v42 = vpop.f32.mrb[11].mxu1  ;;  %v2497_v36 = vld [vmem:[%s3112_s8] sm:$0xff] (!%p2026_p2)   ;;  %v2500_v39 = vld [vmem:[%s3113_s9 + $0x10] sm:$0xff] (!%p2026_p2)  }
 0x2bc   : > { %v1324_v43 = vadd.f32 %v2953_v54, %v1279_v38  ;;  %v1282_v44 = vadd.f32 %v1281_v34, %v1184_v42  ;;  %v2499_v38 = vld [vmem:[%s3112_s8 + $0x8] sm:$0xff] (!%p2026_p2)   ;;  %v2503_v42 = vld [vmem:[%s3112_s8 + $0x18] sm:$0xff] (!%p2026_p2)  }
 0x2bd   : > { %v1327_v45 = vadd.f32 %v2953_v54, %v1290_v41  ;;  %v1342_v49 = vmax.f32 %v1326_v40, 0.0  ;;  %v2501_v40 = vld [vmem:[%s3112_s8 + $0x10] sm:$0xff] (!%p2026_p2)   ;;  %v2502_v41 = vld [vmem:[%s3113_s9 + $0x18] sm:$0xff] (!%p2026_p2)  }
 0x2be   : > { %v1325_v46 = vadd.f32 %v2953_v54, %v1282_v44  ;;  %v1340_v51 = vmax.f32 %v1324_v43, 0.0  ;;  %v2504_v43 = vld [vmem:[%s3113_s9 + $0x20] sm:$0xff] (!%p2026_p2)  }
 0x2bf   : > { %v1343_v50 = vmax.f32 %v1327_v45, 0.0  ;;  %v2505_v44 = vld [vmem:[%s3112_s8 + $0x20] sm:$0xff] (!%p2026_p2)   ;;  %v2506_v45 = vld [vmem:[%s3113_s9 + $0x28] sm:$0xff] (!%p2026_p2)  }
 0x2c0   : > { %v1341_v52 = vmax.f32 %v1325_v46, 0.0 }
 0x2c1   : > { %v1405_v53 = vpack.c.bf16 %v1343_v50, %v1342_v49  ;;  %v2507_v50 = vld [vmem:[%s3112_s8 + $0x28] sm:$0xff] (!%p2026_p2)  }
 0x2c2   : > { %v1404_v55 = vpack.c.bf16 %v1341_v52, %v1340_v51  ;;  %v2512_v52 = vld [vmem:[%s2773_s29] sm:$0xff] (!%p2026_p2)  }
 0x2c4   : > { %v2280_v56 = vpop.f32.mrb[12].mxu0  ;;  %2290 = vmatprep.subr.bf16.mxu0 %v1404_v55  ;;  %2358 = vmatprep.subr.bf16.mxu1 %v1404_v55 }
 0x2c5   : > { %v1294_v57 = vpop.f32.mrb[13].mxu0  ;;  %2291 = vmatpush3.bf16.msra.mxu0 %v1404_v55  ;;  %2366 = vmatpush3.bf16.msra.mxu1 %v1404_v55  ;;  %v2509_v55 = vld [vmem:[%s3112_s8 + $0x30] sm:$0xff] (!%p2026_p2)  }
 0x2c6   : > { %v2281_v58 = vpop.f32.mrb[14].mxu0  ;;  %2292 = vmatprep.subr.bf16.mxu0 %v1405_v53  ;;  %2359 = vmatprep.subr.bf16.mxu1 %v1405_v53 }
 0x2c7   : > { %v1297_v59 = vpop.f32.mrb[15].mxu0 }
 0x2c8   : > { %v2248_v60 = vpop.f32.mrb[12].mxu1 }
 0x2c9   : > { %v1303_v61 = vadd.f32 %v2280_v56, %v2248_v60  ;;  %v1197_v62 = vpop.f32.mrb[13].mxu1  ;;  %2293 = vmatpush3.bf16.msra.mxu0 %v1405_v53  ;;  %2367 = vmatpush3.bf16.msra.mxu1 %v1405_v53  ;;  %v2508_v53 = vld [vmem:[%s3113_s9 + $0x30] sm:$0xff] (!%p2026_p2)   ;;  %v2510_v56 = vld [vmem:[%s3113_s9 + $0x38] sm:$0xff] (!%p2026_p2)  }
 0x2ca   : > { %v1295_v63 = vadd.f32 %v1294_v57, %v1197_v62  ;;  %v2249_v1 = vpop.f32.mrb[14].mxu1  ;;  %v2511_v57 = vld [vmem:[%s3112_s8 + $0x38] sm:$0xff] (!%p2026_p2)  }
 0x2cb   : > { %v1330_v2 = vadd.f32 %v2953_v54, %v1303_v61  ;;  %v1306_v3 = vadd.f32 %v2281_v58, %v2249_v1  ;;  %v1200_v4 = vpop.f32.mrb[15].mxu1 }
 0x2cc   : > { %v1328_v5 = vadd.f32 %v2953_v54, %v1295_v63  ;;  %v1298_v6 = vadd.f32 %v1297_v59, %v1200_v4  ;;  %v2513_v63 = vld [vmem:[%s2773_s29 + $0x8] sm:$0xff] (!%p2026_p2)  }
 0x2cd   : > { %v1331_v7 = vadd.f32 %v2953_v54, %v1306_v3  ;;  %v1346_v9 = vmax.f32 %v1330_v2, 0.0  ;;  %v2514_v2 = vld [vmem:[%s2773_s29 + $0x10] sm:$0xff] (!%p2026_p2)  }
 0x2ce   : > { %v1329_v8 = vadd.f32 %v2953_v54, %v1298_v6  ;;  %v1344_v11 = vmax.f32 %v1328_v5, 0.0  ;;  %v1394_v54 = vld [vmem:[#allocation4 + $0x10] sm:$0xff]  ;;  %v2515_v6 = vld [vmem:[%s2773_s29 + $0x18] sm:$0xff] (!%p2026_p2)  }
 0x2cf   : > { %v1347_v10 = vmax.f32 %v1331_v7, 0.0 }
 0x2d0   : > { %v1345_v12 = vmax.f32 %v1329_v8, 0.0 }
 0x2d1   : > { %v1407_v13 = vpack.c.bf16 %v1347_v10, %v1346_v9  ;;  %v2047_v9 = vld [vmem:[%s3114_s10] ss:$0 sm:$0xff] (!%p2026_p2) }
 0x2d2   : > { %v1406_v14 = vpack.c.bf16 %v1345_v12, %v1344_v11 }
 0x2d4   : > { %2294 = vmatprep.subr.bf16.mxu0 %v1406_v14  ;;  %2360 = vmatprep.subr.bf16.mxu1 %v1406_v14 }
 0x2d5   : > { %2295 = vmatpush3.bf16.msra.mxu0 %v1406_v14  ;;  %2368 = vmatpush3.bf16.msra.mxu1 %v1406_v14 }
 0x2d6   : > { %2296 = vmatprep.subr.bf16.mxu0 %v1407_v13  ;;  %2361 = vmatprep.subr.bf16.mxu1 %v1407_v13 }
 0x2d9   : > { %2297 = vmatpush3.bf16.msra.mxu0 %v1407_v13  ;;  %2369 = vmatpush3.bf16.msra.mxu1 %v1407_v13 }
 0x2da   : > { %2306 = vmatprep.subr.bf16.mxu1 (!%p2026_p2), %v2496_v35  ;;  %2330 = vmatprep.subr.bf16.mxu0 (!%p2026_p2), %v2497_v36 }
 0x2dc   : > { %2299 = vmatmul.mubr.msk.bf16.vlgmr.msra.gmra.mrb[16].mxu0 %vm2942_vm9, %v2614_v0  ;;  %2303 = vmatmul.mubr.msk.bf16.vlgmr.msra.gmra.mrb[16].mxu1 %vm2946_vm11, %v2614_v0 }
 0x2dd   : > { %2307 = vmatpush3.bf16.msra.mxu1 (!%p2026_p2), %v2496_v35  ;;  %2331 = vmatpush3.bf16.msra.mxu0 (!%p2026_p2), %v2497_v36 }
 0x2de   : > { %2308 = vmatprep.subr.bf16.mxu1 (!%p2026_p2), %v2498_v37  ;;  %2332 = vmatprep.subr.bf16.mxu0 (!%p2026_p2), %v2499_v38 }
 0x2df   : > { %2346 = vmatprep.mubr.bf16.mxu0 (!%p2026_p2), %v2512_v52 }
 0x2e1   : > { %2309 = vmatpush3.bf16.msra.mxu1 (!%p2026_p2), %v2498_v37  ;;  %2333 = vmatpush3.bf16.msra.mxu0 (!%p2026_p2), %v2499_v38 }
 0x2e2   : > { %2310 = vmatprep.subr.bf16.mxu1 (!%p2026_p2), %v2500_v39  ;;  %2334 = vmatprep.subr.bf16.mxu0 (!%p2026_p2), %v2501_v40 }
 0x2e5   : > { %2311 = vmatpush3.bf16.msra.mxu1 (!%p2026_p2), %v2500_v39  ;;  %2335 = vmatpush3.bf16.msra.mxu0 (!%p2026_p2), %v2501_v40 }
 0x2e6   : > { %2312 = vmatprep.subr.bf16.mxu1 (!%p2026_p2), %v2502_v41  ;;  %2336 = vmatprep.subr.bf16.mxu0 (!%p2026_p2), %v2503_v42 }
 0x2e9   : > { %2313 = vmatpush3.bf16.msra.mxu1 (!%p2026_p2), %v2502_v41  ;;  %2337 = vmatpush3.bf16.msra.mxu0 (!%p2026_p2), %v2503_v42 }
 0x2ea   : > { %2314 = vmatprep.subr.bf16.mxu1 (!%p2026_p2), %v2504_v43  ;;  %2338 = vmatprep.subr.bf16.mxu0 (!%p2026_p2), %v2505_v44 }
 0x2ed   : > { %2315 = vmatpush3.bf16.msra.mxu1 (!%p2026_p2), %v2504_v43  ;;  %2339 = vmatpush3.bf16.msra.mxu0 (!%p2026_p2), %v2505_v44 }
 0x2ee   : > { %2316 = vmatprep.subr.bf16.mxu1 (!%p2026_p2), %v2506_v45  ;;  %2340 = vmatprep.subr.bf16.mxu0 (!%p2026_p2), %v2507_v50 }
 0x2f1   : > { %2317 = vmatpush3.bf16.msra.mxu1 (!%p2026_p2), %v2506_v45  ;;  %2341 = vmatpush3.bf16.msra.mxu0 (!%p2026_p2), %v2507_v50 }
 0x2f2   : > { %2318 = vmatprep.subr.bf16.mxu1 (!%p2026_p2), %v2508_v53  ;;  %2342 = vmatprep.subr.bf16.mxu0 (!%p2026_p2), %v2509_v55 }
 0x2f5   : > { %2319 = vmatpush3.bf16.msra.mxu1 (!%p2026_p2), %v2508_v53  ;;  %2343 = vmatpush3.bf16.msra.mxu0 (!%p2026_p2), %v2509_v55 }
 0x2f6   : > { %2320 = vmatprep.subr.bf16.mxu1 (!%p2026_p2), %v2510_v56  ;;  %2344 = vmatprep.subr.bf16.mxu0 (!%p2026_p2), %v2511_v57 }
 0x2f9   : > { %2321 = vmatpush3.bf16.msra.mxu1 (!%p2026_p2), %v2510_v56  ;;  %2345 = vmatpush3.bf16.msra.mxu0 (!%p2026_p2), %v2511_v57 }
 0x2fc   : > { %2347 = vmatmul.mubr.bf16.vlgmr.msra.gmra.mrb[0].mxu0 (!%p2026_p2), %v2513_v63 }
 0x2fd   : > { %2350 = vmatprep.mubr.bf16.mxu0 (!%p2026_p2), %v2514_v2 }
 0x304   : > { %2351 = vmatmul.mubr.bf16.gmra.mrb[4].mxu0 (!%p2026_p2), %v2515_v6 }
 0x3af   : > { %v2300_v18 = vpop.f32.mrb[16].mxu0  ;;  %v2304_v19 = vpop.f32.mrb[16].mxu1  ;;  %1492 = sbr.rel (%p2026_p2) target bundleno = 1190 (0x4a6), region = 72 }
 0x3b0   : > { %v1475_v22 = vadd.f32 %v2300_v18, %v1394_v54  ;;  %v1479_v23 = vadd.f32 %v2304_v19, %v1398_v15  ;;  %v1442_v24 = vpop.f32.mrb[17].mxu0  ;;  %v1458_v25 = vpop.f32.mrb[17].mxu1 }
 0x3b1   : > { %v1473_v47 = vadd.f32 %v1442_v24, %v1392_v16  ;;  %v1477_v28 = vadd.f32 %v1458_v25, %v1396_v17  ;;  %v2301_v29 = vpop.f32.mrb[18].mxu0  ;;  %v2305_v30 = vpop.f32.mrb[18].mxu1 }
 0x3b2   : > { %1483 = vst [vmem:[#allocation4 + $0x10] sm:$0xff] %v1475_v22  ;;  %1487 = vst [vmem:[#allocation4 + $0x30] sm:$0xff] %v1479_v23  ;;  %v1476_v0 = vadd.f32 %v2301_v29, %v1395_v20  ;;  %v1480_v48 = vadd.f32 %v2305_v30, %v1399_v21  ;;  %v1445_v31 = vpop.f32.mrb[19].mxu0  ;;  %v1461_v32 = vpop.f32.mrb[19].mxu1 }
 0x3b3   : > { %1481 = vst [vmem:[#allocation4] sm:$0xff] %v1473_v47  ;;  %1485 = vst [vmem:[#allocation4 + $0x20] sm:$0xff] %v1477_v28  ;;  %v1474_v33 = vadd.f32 %v1445_v31, %v1393_v26  ;;  %v1478_v34 = vadd.f32 %v1461_v32, %v1397_v27 }
 0x3b4   : > { %1484 = vst [vmem:[#allocation4 + $0x18] sm:$0xff] %v1476_v0  ;;  %1488 = vst [vmem:[#allocation4 + $0x38] sm:$0xff] %v1480_v48 }
 0x3b5   : > { %1482 = vst [vmem:[#allocation4 + $0x8] sm:$0xff] %v1474_v33  ;;  %1486 = vst [vmem:[#allocation4 + $0x28] sm:$0xff] %v1478_v34 }
 0x3b9   : > { %v1503_v58 = vld [vmem:[#allocation4 + $0x10] sm:$0xff] }
 0x3ba   : > { %v1501_v46 = vld [vmem:[#allocation4] sm:$0xff]  ;;  %v1507_v3 = vld [vmem:[#allocation4 + $0x30] sm:$0xff] }
 0x3bb   : > { %v1504_v59 = vld [vmem:[#allocation4 + $0x18] sm:$0xff]  ;;  %v1505_v60 = vld [vmem:[#allocation4 + $0x20] sm:$0xff] }
 0x3bc   : > { %v1502_v49 = vld [vmem:[#allocation4 + $0x8] sm:$0xff]  ;;  %v1510_v62 = vpack.c.bf16 %v1504_v59, %v1503_v58  ;;  %v1508_v4 = vld [vmem:[#allocation4 + $0x38] sm:$0xff] }
 0x3bd   : > { %v1509_v51 = vpack.c.bf16 %v1502_v49, %v1501_v46  ;;  %v1506_v61 = vld [vmem:[#allocation4 + $0x28] sm:$0xff]  ;;  %v1512_v5 = vpack.c.bf16 %v1508_v4, %v1507_v3 }
 0x3be   : > { %v1511_v1 = vpack.c.bf16 %v1506_v61, %v1505_v60 }
 0x3bf   : > { %2322 = vmatprep.mubr.bf16.mxu1 %v1509_v51 }
 0x3c0   : > { %2323 = vmatmul.mubr.bf16.vlgmr.msra.gmra.mrb[0].mxu1 %v1510_v62 }
 0x3c1   : > { %2326 = vmatprep.mubr.bf16.mxu1 %v1511_v1 }
 0x3c8   : > { %2327 = vmatmul.mubr.bf16.gmra.mrb[4].mxu1 %v1512_v5 }
 0x3cf   : > { %v2348_v8 = vpop.f32.mrb[0].mxu0 }
 0x3d0   : > { %v1764_v12 = vpop.f32.mrb[1].mxu0 }
 0x3d1   : > { %v2349_v54 = vpop.f32.mrb[2].mxu0 }
 0x3d2   : > { %v1767_v18 = vpop.f32.mrb[3].mxu0 }
 0x3d7   : > { %v2352_v47 = vpop.f32.mrb[4].mxu0 }
 0x3d8   : > { %v1780_v30 = vpop.f32.mrb[5].mxu0 }
 0x3d9   : > { %v2353_v31 = vpop.f32.mrb[6].mxu0 }
 0x3da   : > { %v1783_v35 = vpop.f32.mrb[7].mxu0 }
 0x493   : > { %v2324_v7 = vpop.f32.mrb[0].mxu1 }
 0x494   : > { %v1627_v10 = vpop.f32.mrb[1].mxu1  ;;  %v1773_v11 = vadd.f32 %v2348_v8, %v2324_v7 }
 0x495   : > { %v2325_v13 = vpop.f32.mrb[2].mxu1  ;;  %v1765_v14 = vadd.f32 %v1764_v12, %v1627_v10 }
 0x496   : > { %v1630_v15 = vpop.f32.mrb[3].mxu1  ;;  %v1804_v16 = vadd.f32 %v2047_v9, %v1773_v11  ;;  %v1776_v17 = vadd.f32 %v2349_v54, %v2325_v13 }
 0x497   : > { %v1802_v19 = vadd.f32 %v2047_v9, %v1765_v14  ;;  %v1768_v20 = vadd.f32 %v1767_v18, %v1630_v15 }
 0x498   : > { %v1812_v21 = vmax.f32 %v1804_v16, 0.0  ;;  %v1805_v22 = vadd.f32 %v2047_v9, %v1776_v17 }
 0x499   : > { %v1810_v23 = vmax.f32 %v1802_v19, 0.0  ;;  %v1803_v24 = vadd.f32 %v2047_v9, %v1768_v20 }
 0x49a   : > { %1820 = vst [vmem:[%s2775_s27 + $0x10] sm:$0xff] %v1812_v21  ;;  %v1813_v25 = vmax.f32 %v1805_v22, 0.0 }
 0x49b   : > { %v2328_v26 = vpop.f32.mrb[4].mxu1  ;;  %1818 = vst [vmem:[%s2775_s27] sm:$0xff] %v1810_v23  ;;  %v1811_v27 = vmax.f32 %v1803_v24, 0.0 }
 0x49c   : > { %v1643_v28 = vpop.f32.mrb[5].mxu1  ;;  %1821 = vst [vmem:[%s2775_s27 + $0x18] sm:$0xff] %v1813_v25  ;;  %v1789_v29 = vadd.f32 %v2352_v47, %v2328_v26 }
 0x49d   : > { %v2329_v0 = vpop.f32.mrb[6].mxu1  ;;  %1819 = vst [vmem:[%s2775_s27 + $0x8] sm:$0xff] %v1811_v27  ;;  %v1781_v48 = vadd.f32 %v1780_v30, %v1643_v28 }
 0x49e   : > { %v1646_v32 = vpop.f32.mrb[7].mxu1  ;;  %v1808_v33 = vadd.f32 %v2047_v9, %v1789_v29  ;;  %v1792_v34 = vadd.f32 %v2353_v31, %v2329_v0 }
 0x49f   : > { %v1806_v36 = vadd.f32 %v2047_v9, %v1781_v48  ;;  %v1784_v37 = vadd.f32 %v1783_v35, %v1646_v32 }
 0x4a0   : > { %v1816_v38 = vmax.f32 %v1808_v33, 0.0  ;;  %v1809_v39 = vadd.f32 %v2047_v9, %v1792_v34 }
 0x4a1   : > { %v1814_v40 = vmax.f32 %v1806_v36, 0.0  ;;  %v1807_v41 = vadd.f32 %v2047_v9, %v1784_v37 }
 0x4a2   : > { %1824 = vst [vmem:[%s2775_s27 + $0x30] sm:$0xff] %v1816_v38  ;;  %v1817_v42 = vmax.f32 %v1809_v39, 0.0 }
 0x4a3   : > { %1822 = vst [vmem:[%s2775_s27 + $0x20] sm:$0xff] %v1814_v40  ;;  %v1815_v43 = vmax.f32 %v1807_v41, 0.0 }
 0x4a4   : > { %1825 = vst [vmem:[%s2775_s27 + $0x38] sm:$0xff] %v1817_v42 }
 0x4a5   : > { %1823 = vst [vmem:[%s2775_s27 + $0x28] sm:$0xff] %v1815_v43 }
 0x4a6 PF: > { %s2053_s25 = sshll.u32 %s2598_s21, 10  ;;  %s3146_s16 = sld [smem:[#allocation18_spill]] }
 0x4a7   : > { %s1840_s28 = sshll.u32 %s2775_s27, 4  ;;  %s3147_s20 = sand.u32 1, %s2586_s18   ;;  %s3048_s28 = int_to_ptr.vmem [resolvable:$true] %s1840_s28 }
 0x4a8   : > { %s3052_s11 = scalar_lea.sflag [#allocation6], %s3147_s20  ;;  %s2516_s24 = scalar_lea.vmem %s3048_s28, 1024 }
 0x4a9   : > { %p2517_p4 = scmp.ne.s32.totalorder %s3048_s28, %s2516_s24  ;;  %s2615_s21 = smov [#allocation5]  }
 0x4aa   : > { %s2520_s19 = sshll.u32 %s2615_s21, 4  ;;  %s2521_s19 = int_to_ptr.vmem [resolvable:$false] %s2520_s19 }
 0x4ab   : > { %p2518_p5 = pnand %p2517_p4, %p2727_p3  ;;  %s2522_s23 = scalar_lea.vmem %s2521_s19, 2048 }
 0x4ac   : > { %s3045_s22 = scalar_lea.hbm %s3146_s16, %s2053_s25  ;;  %p2523_p7 = scmp.lt.s32.totalorder %s3048_s28, %s2521_s19 }
 0x4ad   : > { %p2519_p6 = pneg %p2518_p5  ;;  %p2524_p8 = scmp.lt.s32.totalorder %s2522_s23, %s2516_s24 }
 0x4af   : > { %p2525_p10 = por %p2524_p8, %p2523_p7 }
 0x4b1   : > { %p2526_p11 = pnand %p2525_p10, %p2519_p6 }
 0x4b3   : > { %2529 = shalt.err (!%p2526_p11)
}
 0x4b4   : > { %s2530_s27 = scalar_lea.hbm %s3045_s22, 1024  ;;  %s2534_s26 = scalar_lea.hbm %s3146_s16, 2048 }
 0x4b5   : > { %p2531_p12 = scmp.ne.s32.totalorder %s3045_s22, %s2530_s27  ;;  %p2535_p1 = scmp.lt.u32.totalorder %s3045_s22, %s3146_s16 }
 0x4b6   : > { %p2536_p2 = scmp.lt.u32.totalorder %s2534_s26, %s2530_s27  ;;  %p2538_p5 = scmp.lt.u32.totalorder %s2530_s27, %s3045_s22 }
 0x4b7   : > { %p2532_p13 = pnand %p2531_p12, %p2727_p3 }
 0x4b8   : > { %p2537_p4 = por %p2536_p2, %p2535_p1 }
 0x4b9   : > { %p2533_p0 = pneg %p2532_p13 }
 0x4ba   : > { %p2539_p6 = por %p2538_p5, %p2537_p4 }
 0x4bc   : > { %p2540_p7 = pnand %p2539_p6, %p2533_p0 }
 0x4be   : > { %2543 = shalt.err (!%p2540_p7)
}
 0x4bf   : > { %s2616_s25 = smov 128   ;;  %s2617_s12 = smov 8  }
 0x4c0   : > { %2394 = dma.vmem_to_hbm [thread:$0]  (%p2727_p3), %s3048_s28, 1024, %s3045_s22, %s3052_s11, %s2616_s25, %s2616_s25, %s2617_s12  }
 0x4c1 PF: > { %s3148_s13 = sld [smem:[#allocation12_spill]]  ;;  %s3149_s20 = sld [smem:[#allocation8_spill]] }
 0x4c7   : > { %p2400_p8 = scmp.ge.s32.totalorder %s3148_s13, 2  ;;  %s1855_s21 = sand.u32 1, %s3149_s20  }
 0x4c8   : > { %s1856_s19 = scalar_lea.sflag [#allocation6], %s1855_s21 }
 0x4c9   : > { %p2397_p10 = pnand %p2400_p8, %p2737_p9 }
 0x4cb   : > { %2577 = dma.done.wait (!%p2397_p10), %s1856_s19, 1024  }
 0x4cc   : > { %2579 = vsyncadd (!%p2397_p10), %s1856_s19, 4294966272  ;;  %s24_s24 = sadd.s32 1, %s3148_s13   ;;  %s3151_s23 = sld [smem:[#allocation9_spill]] }
 0x4cd   : > { %p21_p11 = scmp.ge.s32.totalorder %s24_s24, 28   ;;  %s3152_s19 = sld [smem:[#allocation17_spill]] }
 0x4ce   : > { %s3153_s20 = sld [smem:[#allocation10_spill]]  ;;  %s3154_s21 = sld [smem:[#allocation11_spill]] }
 0x4cf   : > { %s3155_s22 = sld [smem:[#allocation13_spill]]  ;;  %s3156_s29 = sld [smem:[#allocation15_spill]] }
 0x4d0   : > { %s3157_s17 = smov %s2586_s18  ;;  %23 = sbr.rel (!%p21_p11) target bundleno = 7 (0x7), region = 116 }
 0x4d2   : > { %s3158_s18 = smov %s3151_s23 }
 0x4d5   : > { %s3159_s23 = smov %s3156_s29 }
 0x4d7   :  { %1861 = vsyncpa [#allocation6], 1 }
 0x4d8   :  { %1863 = vsyncpa [#allocation6 + $0x1], 1 }

</bundles_post_ra>
